<compile_context>
chip_gen: v7x
topology: tpu7x:2x2x1
jax: 0.10.0
libtpu: 0.0.40
codegen_flags: <defaults>
</compile_context>

<pallas_src>
import functools

import jax
import jax.numpy as jnp
from jax import lax
from jax.experimental import pallas as pl
from jax.experimental.pallas import tpu as pltpu


# Rows of the packed (16, H) bias / LayerNorm vector block.
_V_FC1B, _V_FC2B, _V_LN1G, _V_LN1B, _V_LN2G, _V_LN2B, _V_BO, _V_FFB1, _V_FFB2 = range(9)
_V_ROWS = 16  # padded to a sublane multiple


# ----------------------------------------------------------------------------
# Fused Pallas kernel: full TemporalConsensus forward for one batch chunk.
# ----------------------------------------------------------------------------
def _temporal_consensus_kernel(
    # inputs
    x_ref,            # (Bt, T, F)         f32
    w12_ref,          # (F, 2H)            bf16  [fc_v | fc_v2]
    vecs_ref,         # (_V_ROWS, H)       f32   packed biases / LN params
    wqkv_ref,         # (3, nhead, H, dh)  bf16  head-major Q/K/V weights
    bqkv_ref,         # (3, nhead, 1, dh)  f32   head-major Q/K/V biases
    wo_ref,           # (nhead, dh, H)     bf16  head-major output projection
    ffn_w1_ref,       # (H, H)             bf16
    ffn_w2_ref,       # (H, H)             bf16
    convw_ref,        # (3, 3H, H)         bf16  tap-fused dilated conv weights
    conv_scale_ref,   # (3, 1, H)          f32   folded BatchNorm scale
    conv_shift_ref,   # (3, 1, H)          f32   folded conv-bias + BN shift
    # outputs
    out_ref,          # (Bt, T, 4H)        f32
    *, nhead,
):
    Bt, T, F = x_ref.shape
    H = ffn_w1_ref.shape[0]
    dh = H // nhead
    rows = Bt * T
    scale = 1.0 / float(dh) ** 0.5
    bf16 = jnp.bfloat16

    vecs = vecs_ref[...]                               # (16, H) f32
    vrow = lambda i: vecs[i:i + 1]                     # (1, H)

    # ---- fused fc_v / fc_v2: one bf16 (Bt*T, F) @ (F, 2H) matmul -----------
    x2d = x_ref[...].reshape(rows, F).astype(bf16)
    y12 = jnp.dot(x2d, w12_ref[...], preferred_element_type=jnp.float32)
    x1 = y12[:, :H] + vrow(_V_FC1B)                    # long-branch input  (rows, H)
    x2 = y12[:, H:] + vrow(_V_FC2B)                    # short-branch input (rows, H)

    def layer_norm(v, g, b):
        m = jnp.mean(v, axis=-1, keepdims=True)
        c = v - m
        var = jnp.mean(c * c, axis=-1, keepdims=True)
        return c * lax.rsqrt(var + 1e-5) * g + b

    # ---- long branch: pre-norm transformer encoder layer (eval mode) -------
    h = layer_norm(x1, vrow(_V_LN1G), vrow(_V_LN1B)).astype(bf16)
    bqkv = bqkv_ref[...]                               # (3, nhead, 1, dh) f32
    attn = jnp.zeros((rows, H), jnp.float32)
    for hd in range(nhead):
        # Head-sliced weights (major-dim ref index -> no lane sub-slices).
        q = (jnp.dot(h, wqkv_ref[0, hd], preferred_element_type=jnp.float32)
             + bqkv[0, hd]).reshape(Bt, T, dh)
        k = (jnp.dot(h, wqkv_ref[1, hd], preferred_element_type=jnp.float32)
             + bqkv[1, hd]).reshape(Bt, T, dh)
        v = (jnp.dot(h, wqkv_ref[2, hd], preferred_element_type=jnp.float32)
             + bqkv[2, hd]).reshape(Bt, T, dh)
        s = jnp.einsum("bqd,bkd->bqk", q.astype(bf16), k.astype(bf16),
                       preferred_element_type=jnp.float32) * scale
        s = s - jnp.max(s, axis=-1, keepdims=True)
        p = jnp.exp(s)
        p = p / jnp.sum(p, axis=-1, keepdims=True)     # exact divide
        ctx = jnp.einsum("bqk,bkd->bqd", p.astype(bf16), v.astype(bf16),
                         preferred_element_type=jnp.float32)
        attn = attn + jnp.dot(ctx.reshape(rows, dh).astype(bf16), wo_ref[hd],
                              preferred_element_type=jnp.float32)
    x1 = x1 + attn + vrow(_V_BO)

    h2 = layer_norm(x1, vrow(_V_LN2G), vrow(_V_LN2B)).astype(bf16)
    ff = jnp.maximum(
        jnp.dot(h2, ffn_w1_ref[...], preferred_element_type=jnp.float32)
        + vrow(_V_FFB1), 0.0)
    ff = (jnp.dot(ff.astype(bf16), ffn_w2_ref[...],
                  preferred_element_type=jnp.float32) + vrow(_V_FFB2))
    out_long = x1 + ff                                  # (rows, H) f32

    # ---- short branch: 3 dilated conv1d + folded BN + ReLU + residual ------
    # Shifted conv operands live in registers: pltpu.roll (XLU) on the
    # flattened (rows, H) slab + a per-element local-time mask.  The mask also
    # zeroes the rows that rolled across a batch boundary, so no scratch and no
    # sublane-misaligned reloads.  The 3 taps fuse into one K=3H matmul.
    t_idx = lax.broadcasted_iota(jnp.int32, (Bt, T, H), 1).reshape(rows, H)
    x2_bf = x2.astype(bf16)
    shorts = []
    for d_i, dil in enumerate((1, 2, 3)):
        left = jnp.where(t_idx >= dil, pltpu.roll(x2, dil, axis=0), 0.0)        # x[t-d]
        right = jnp.where(t_idx < T - dil, pltpu.roll(x2, rows - dil, axis=0), 0.0)  # x[t+d]
        xcat = jnp.concatenate(
            [left.astype(bf16), x2_bf, right.astype(bf16)], axis=-1)            # (rows, 3H)
        y = jnp.dot(xcat, convw_ref[d_i], preferred_element_type=jnp.float32)
        y = jnp.maximum(y * conv_scale_ref[d_i] + conv_shift_ref[d_i], 0.0)
        shorts.append(y + x2)

    # ---- lane-dense (Bt, T, 4H = 128) store ---------------------------------
    out = jnp.concatenate([out_long] + shorts, axis=-1)                         # (rows, 4H)
    out_ref[...] = out.reshape(Bt, T, 4 * H)


# ----------------------------------------------------------------------------
# Wrapper: one-time weight prep + single pallas_call over the batch-chunk grid.
# ----------------------------------------------------------------------------
def _fold_bn(conv_b, g, b, mean, var, eps=1e-5):
    scale = g / jnp.sqrt(var + eps)
    shift = (conv_b - mean) * scale + b
    return scale, shift


def _const_spec(shape):
    rank = len(shape)
    return pl.BlockSpec(tuple(shape), lambda g, _r=rank: (0,) * _r)


def temporal_consensus(x, p, *, nhead=4):
    """x: (B, T, len_feature) -> (B, T, 4*hid_dim), channels-last."""
    B, T, F = x.shape
    H = p["fc_v_w"].shape[1]
    dh = H // nhead
    bf16 = jnp.bfloat16

    # Batch folding: largest divisor of B with Bt*T <= ~256 rows (MXU M fill).
    Bt = 1
    for cand in range(1, B + 1):
        if B % cand == 0 and cand * T <= max(256, T):
            Bt = cand
    G = B // Bt

    # --- one-time weight packing (constant-folded under jit) ----------------
    w12 = jnp.concatenate([p["fc_v_w"], p["fc_v2_w"]], axis=1).astype(bf16)     # (F, 2H)

    vec_rows = [p["fc_v_b"], p["fc_v2_b"], p["ln1_g"], p["ln1_b"],
                p["ln2_g"], p["ln2_b"], p["bo"], p["ffn_b1"], p["ffn_b2"]]
    vec_rows += [jnp.zeros((H,), jnp.float32)] * (_V_ROWS - len(vec_rows))
    vecs = jnp.stack(vec_rows).astype(jnp.float32)                              # (16, H)

    def heads_w(w):                                  # (H, H) -> (nhead, H, dh)
        return jnp.transpose(w.reshape(H, nhead, dh), (1, 0, 2))

    wqkv_h = jnp.stack([heads_w(p["wq"]), heads_w(p["wk"]),
                        heads_w(p["wv"])]).astype(bf16)                         # (3, nh, H, dh)
    bqkv_h = jnp.stack([p["bq"].reshape(nhead, 1, dh),
                        p["bk"].reshape(nhead, 1, dh),
                        p["bv"].reshape(nhead, 1, dh)]).astype(jnp.float32)     # (3, nh, 1, dh)
    wo_h = p["wo"].reshape(nhead, dh, H).astype(bf16)                           # (nh, dh, H)
    ffn_w1 = p["ffn_w1"].astype(bf16)
    ffn_w2 = p["ffn_w2"].astype(bf16)

    convw = jnp.stack([p["conv1_w"].reshape(3 * H, H),
                       p["conv2_w"].reshape(3 * H, H),
                       p["conv3_w"].reshape(3 * H, H)]).astype(bf16)            # (3, 3H, H)
    scales, shifts = [], []
    for i in range(1, 4):
        sc, sh = _fold_bn(p[f"conv{i}_b"], p[f"bn{i}_g"], p[f"bn{i}_b"],
                          p[f"bn{i}_mean"], p[f"bn{i}_var"])
        scales.append(sc)
        shifts.append(sh)
    conv_scale = jnp.stack(scales).reshape(3, 1, H).astype(jnp.float32)
    conv_shift = jnp.stack(shifts).reshape(3, 1, H).astype(jnp.float32)

    # --- explicit VMEM budget (weights + double-buffered I/O blocks) --------
    weights = (w12, vecs, wqkv_h, bqkv_h, wo_h, ffn_w1, ffn_w2, convw,
               conv_scale, conv_shift)
    nbytes = lambda a: int(a.size) * a.dtype.itemsize
    weight_bytes = sum(nbytes(a) for a in weights)
    io_bytes = Bt * T * (F + 4 * H) * 4
    budget = 2 * (weight_bytes + io_bytes) + (1 << 20)   # default double-buffering
    vmem_limit = int(min(100 * (1 << 20), max(8 * (1 << 20), 2 * budget)))

    kern = functools.partial(_temporal_consensus_kernel, nhead=nhead)
    return pl.pallas_call(
        kern,
        out_shape=jax.ShapeDtypeStruct((B, T, 4 * H), jnp.float32),
        grid=(G,),
        in_specs=[
            pl.BlockSpec((Bt, T, F), lambda g: (g, 0, 0)),   # x (batch chunk)
            _const_spec(w12.shape),
            _const_spec(vecs.shape),
            _const_spec(wqkv_h.shape),
            _const_spec(bqkv_h.shape),
            _const_spec(wo_h.shape),
            _const_spec(ffn_w1.shape),
            _const_spec(ffn_w2.shape),
            _const_spec(convw.shape),
            _const_spec(conv_scale.shape),
            _const_spec(conv_shift.shape),
        ],
        out_specs=pl.BlockSpec((Bt, T, 4 * H), lambda g: (g, 0, 0)),
        compiler_params=pltpu.CompilerParams(
            dimension_semantics=("parallel",),
            vmem_limit_bytes=vmem_limit),
    )(x, w12, vecs, wqkv_h, bqkv_h, wo_h, ffn_w1, ffn_w2, convw,
      conv_scale, conv_shift)


# ----------------------------------------------------------------------------
# Pure-JAX f32 reference (same eval-mode semantics) for self-validation.
# ----------------------------------------------------------------------------
def temporal_consensus_ref(x, p, *, nhead=4):
    B, T, F = x.shape
    H = p["fc_v_w"].shape[1]
    dh = H // nhead

    def lin(v, w, b):
        return v @ w + b

    def ln(v, g, b, eps=1e-5):
        m = v.mean(-1, keepdims=True)
        var = ((v - m) ** 2).mean(-1, keepdims=True)
        return (v - m) / jnp.sqrt(var + eps) * g + b

    x1 = lin(x, p["fc_v_w"], p["fc_v_b"])
    h = ln(x1, p["ln1_g"], p["ln1_b"])
    q = lin(h, p["wq"], p["bq"]).reshape(B, T, nhead, dh).transpose(0, 2, 1, 3)
    k = lin(h, p["wk"], p["bk"]).reshape(B, T, nhead, dh).transpose(0, 2, 1, 3)
    v = lin(h, p["wv"], p["bv"]).reshape(B, T, nhead, dh).transpose(0, 2, 1, 3)
    s = jnp.einsum("bhqd,bhkd->bhqk", q, k) / jnp.sqrt(float(dh))
    a = jax.nn.softmax(s, axis=-1)
    ctx = jnp.einsum("bhqk,bhkd->bhqd", a, v).transpose(0, 2, 1, 3).reshape(B, T, H)
    x1 = x1 + lin(ctx, p["wo"], p["bo"])
    h2 = ln(x1, p["ln2_g"], p["ln2_b"])
    ff = lin(jnp.maximum(lin(h2, p["ffn_w1"], p["ffn_b1"]), 0.0),
             p["ffn_w2"], p["ffn_b2"])
    out_long = x1 + ff

    x2 = lin(x, p["fc_v2_w"], p["fc_v2_b"])
    xpad = jnp.pad(x2, ((0, 0), (3, 3), (0, 0)))
    shorts = []
    for i, dil in enumerate((1, 2, 3), start=1):
        acc = jnp.zeros_like(x2)
        for kk in range(3):
            st = 3 + (kk - 1) * dil
            acc = acc + xpad[:, st:st + T, :] @ p[f"conv{i}_w"][kk]
        sc, sh = _fold_bn(p[f"conv{i}_b"], p[f"bn{i}_g"], p[f"bn{i}_b"],
                          p[f"bn{i}_mean"], p[f"bn{i}_var"])
        shorts.append(jnp.maximum(acc * sc + sh, 0.0) + x2)
    return jnp.concatenate([out_long] + shorts, axis=-1)


# ----------------------------------------------------------------------------
# Deterministic parameter construction
# ----------------------------------------------------------------------------
def make_params(key, len_feature, hid_dim):
    keys = jax.random.split(key, 20)
    s = 0.05
    H, F = hid_dim, len_feature

    def w(k, shape):
        return (s * jax.random.normal(k, shape)).astype(jnp.float32)

    p = {
        "fc_v_w": w(keys[0], (F, H)), "fc_v_b": w(keys[1], (H,)),
        "fc_v2_w": w(keys[2], (F, H)), "fc_v2_b": w(keys[3], (H,)),
        "wq": w(keys[4], (H, H)), "bq": w(keys[5], (H,)),
        "wk": w(keys[6], (H, H)), "bk": w(keys[7], (H,)),
        "wv": w(keys[8], (H, H)), "bv": w(keys[9], (H,)),
        "wo": w(keys[10], (H, H)), "bo": w(keys[11], (H,)),
        "ln1_g": jnp.ones((H,), jnp.float32),
        "ln1_b": jnp.zeros((H,), jnp.float32),
        "ln2_g": jnp.ones((H,), jnp.float32),
        "ln2_b": jnp.zeros((H,), jnp.float32),
        "ffn_w1": w(keys[12], (H, H)), "ffn_b1": w(keys[13], (H,)),
        "ffn_w2": w(keys[14], (H, H)), "ffn_b2": w(keys[15], (H,)),
    }
    for i in range(1, 4):
        p[f"conv{i}_w"] = w(keys[15 + i], (3, H, H))   # (tap, Cin, Cout)
        p[f"conv{i}_b"] = jnp.zeros((H,), jnp.float32)
        p[f"bn{i}_g"] = jnp.ones((H,), jnp.float32)
        p[f"bn{i}_b"] = jnp.zeros((H,), jnp.float32)
        p[f"bn{i}_mean"] = jnp.zeros((H,), jnp.float32)
        p[f"bn{i}_var"] = jnp.ones((H,), jnp.float32)
    return p


# ----------------------------------------------------------------------------
if __name__ == "__main__":
    B, T, LEN_FEATURE, HID_DIM = 2, 8, 16, 32

    key = jax.random.PRNGKey(0)
    k_x, k_p = jax.random.split(key)
    x = jax.random.normal(k_x, (B, T, LEN_FEATURE), dtype=jnp.float32)
    params = make_params(k_p, LEN_FEATURE, HID_DIM)

    fwd = jax.jit(temporal_consensus, static_argnames=("nhead",))
    out = jax.block_until_ready(fwd(x, params, nhead=4))

    assert out.shape == (B, T, 4 * HID_DIM), out.shape
    assert bool(jnp.all(jnp.isfinite(out)))

    ref = jax.block_until_ready(temporal_consensus_ref(x, params, nhead=4))
    max_err = float(jnp.max(jnp.abs(out - ref)))
    # Kernel uses bf16 matmul operands (f32 accumulation); reference is all-f32.
    assert jnp.allclose(out, ref, atol=2e-2, rtol=2e-2), max_err

    print("KERNEL_OK")
</pallas_src>

<mosaic_0001>
module attributes {stable_mosaic.version = 11 : i64} {
  func.func @_temporal_consensus_kernel(%arg0: i32, %arg1: memref<2x8x16xf32, #tpu.memory_space<vmem>>, %arg2: memref<16x64xbf16, #tpu.memory_space<vmem>>, %arg3: memref<16x32xf32, #tpu.memory_space<vmem>>, %arg4: memref<3x4x32x8xbf16, #tpu.memory_space<vmem>>, %arg5: memref<3x4x1x8xf32, #tpu.memory_space<vmem>>, %arg6: memref<4x8x32xbf16, #tpu.memory_space<vmem>>, %arg7: memref<32x32xbf16, #tpu.memory_space<vmem>>, %arg8: memref<32x32xbf16, #tpu.memory_space<vmem>>, %arg9: memref<3x96x32xbf16, #tpu.memory_space<vmem>>, %arg10: memref<3x1x32xf32, #tpu.memory_space<vmem>>, %arg11: memref<3x1x32xf32, #tpu.memory_space<vmem>>, %arg12: memref<2x8x128xf32, #tpu.memory_space<vmem>>) attributes {dimension_semantics = [#tpu.dimension_semantics<parallel>], iteration_bounds = array<i64: 1>, scalar_prefetch = 0 : i64, scratch_operands = 0 : i64, tpu.core_type = #tpu.core_type<tc>, window_params = [{transform_indices = @transform_0, window_bounds = array<i64: 2, 8, 16>}, {pipeline_mode = #tpu.pipeline_mode<synchronous>, transform_indices = @transform_1, window_bounds = array<i64: 16, 64>}, {pipeline_mode = #tpu.pipeline_mode<synchronous>, transform_indices = @transform_2, window_bounds = array<i64: 16, 32>}, {pipeline_mode = #tpu.pipeline_mode<synchronous>, transform_indices = @transform_3, window_bounds = array<i64: 3, 4, 32, 8>}, {pipeline_mode = #tpu.pipeline_mode<synchronous>, transform_indices = @transform_4, window_bounds = array<i64: 3, 4, 1, 8>}, {pipeline_mode = #tpu.pipeline_mode<synchronous>, transform_indices = @transform_5, window_bounds = array<i64: 4, 8, 32>}, {pipeline_mode = #tpu.pipeline_mode<synchronous>, transform_indices = @transform_6, window_bounds = array<i64: 32, 32>}, {pipeline_mode = #tpu.pipeline_mode<synchronous>, transform_indices = @transform_7, window_bounds = array<i64: 32, 32>}, {pipeline_mode = #tpu.pipeline_mode<synchronous>, transform_indices = @transform_8, window_bounds = array<i64: 3, 96, 32>}, {pipeline_mode = #tpu.pipeline_mode<synchronous>, transform_indices = @transform_9, window_bounds = array<i64: 3, 1, 32>}, {pipeline_mode = #tpu.pipeline_mode<synchronous>, transform_indices = @transform_10, window_bounds = array<i64: 3, 1, 32>}, {transform_indices = @transform_11, window_bounds = array<i64: 2, 8, 128>}]} {
    %c0 = arith.constant 0 : index
    %c0_0 = arith.constant 0 : index
    %0 = vector.load %arg3[%c0, %c0_0] : memref<16x32xf32, #tpu.memory_space<vmem>>, vector<16x32xf32>
    %c0_1 = arith.constant 0 : index
    %c0_2 = arith.constant 0 : index
    %c0_3 = arith.constant 0 : index
    %1 = vector.load %arg1[%c0_1, %c0_2, %c0_3] : memref<2x8x16xf32, #tpu.memory_space<vmem>>, vector<2x8x16xf32>
    %2 = vector.shape_cast %1 : vector<2x8x16xf32> to vector<16x16xf32>
    %3 = arith.truncf %2 : vector<16x16xf32> to vector<16x16xbf16>
    %c0_4 = arith.constant 0 : index
    %c0_5 = arith.constant 0 : index
    %4 = vector.load %arg2[%c0_4, %c0_5] : memref<16x64xbf16, #tpu.memory_space<vmem>>, vector<16x64xbf16>
    %cst = arith.constant dense<0.000000e+00> : vector<16x64xf32>
    %5 = tpu.matmul %3, %4, %cst {dimension_numbers = #tpu.dot_dimension_numbers<[1], [0], [0], [1], [0, 0, 1, 1], [], []>} : vector<16x16xbf16>, vector<16x64xbf16>, vector<16x64xf32> -> vector<16x64xf32>
    %6 = vector.extract_strided_slice %5 {offsets = [0, 0], sizes = [16, 32], strides = [1, 1]} : vector<16x64xf32> to vector<16x32xf32>
    %7 = vector.extract_strided_slice %0 {offsets = [0, 0], sizes = [1, 32], strides = [1, 1]} : vector<16x32xf32> to vector<1x32xf32>
    %8 = vector.broadcast %7 : vector<1x32xf32> to vector<16x32xf32>
    %9 = arith.addf %6, %8 : vector<16x32xf32>
    %10 = vector.extract_strided_slice %5 {offsets = [0, 32], sizes = [16, 32], strides = [1, 1]} : vector<16x64xf32> to vector<16x32xf32>
    %11 = vector.extract_strided_slice %0 {offsets = [1, 0], sizes = [1, 32], strides = [1, 1]} : vector<16x32xf32> to vector<1x32xf32>
    %12 = vector.broadcast %11 : vector<1x32xf32> to vector<16x32xf32>
    %13 = arith.addf %10, %12 : vector<16x32xf32>
    %14 = vector.extract_strided_slice %0 {offsets = [2, 0], sizes = [1, 32], strides = [1, 1]} : vector<16x32xf32> to vector<1x32xf32>
    %15 = vector.extract_strided_slice %0 {offsets = [3, 0], sizes = [1, 32], strides = [1, 1]} : vector<16x32xf32> to vector<1x32xf32>
    %cst_6 = arith.constant dense<0.000000e+00> : vector<16xf32>
    %16 = vector.multi_reduction <add>, %9, %cst_6 [1] : vector<16x32xf32> to vector<16xf32>
    %17 = vector.shape_cast %16 : vector<16xf32> to vector<16x1xf32>
    %cst_7 = arith.constant 3.200000e+01 : f32
    %18 = vector.broadcast %cst_7 : f32 to vector<16x1xf32>
    %19 = arith.divf %17, %18 : vector<16x1xf32>
    %20 = vector.broadcast %19 : vector<16x1xf32> to vector<16x32xf32>
    %21 = arith.subf %9, %20 : vector<16x32xf32>
    %22 = arith.mulf %21, %21 : vector<16x32xf32>
    %cst_8 = arith.constant dense<0.000000e+00> : vector<16xf32>
    %23 = vector.multi_reduction <add>, %22, %cst_8 [1] : vector<16x32xf32> to vector<16xf32>
    %24 = vector.shape_cast %23 : vector<16xf32> to vector<16x1xf32>
    %cst_9 = arith.constant 3.200000e+01 : f32
    %25 = vector.broadcast %cst_9 : f32 to vector<16x1xf32>
    %26 = arith.divf %24, %25 : vector<16x1xf32>
    %cst_10 = arith.constant 9.99999974E-6 : f32
    %27 = vector.broadcast %cst_10 : f32 to vector<16x1xf32>
    %28 = arith.addf %26, %27 : vector<16x1xf32>
    %29 = math.rsqrt %28 : vector<16x1xf32>
    %30 = vector.broadcast %29 : vector<16x1xf32> to vector<16x32xf32>
    %31 = arith.mulf %21, %30 : vector<16x32xf32>
    %32 = vector.broadcast %14 : vector<1x32xf32> to vector<16x32xf32>
    %33 = arith.mulf %31, %32 : vector<16x32xf32>
    %34 = vector.broadcast %15 : vector<1x32xf32> to vector<16x32xf32>
    %35 = arith.addf %33, %34 : vector<16x32xf32>
    %36 = arith.truncf %35 : vector<16x32xf32> to vector<16x32xbf16>
    %c0_11 = arith.constant 0 : index
    %c0_12 = arith.constant 0 : index
    %c0_13 = arith.constant 0 : index
    %c0_14 = arith.constant 0 : index
    %37 = vector.load %arg5[%c0_11, %c0_12, %c0_13, %c0_14] : memref<3x4x1x8xf32, #tpu.memory_space<vmem>>, vector<3x4x1x8xf32>
    %cst_15 = arith.constant 0.000000e+00 : f32
    %38 = vector.broadcast %cst_15 : f32 to vector<16x32xf32>
    %c0_16 = arith.constant 0 : index
    %c0_17 = arith.constant 0 : index
    %c0_18 = arith.constant 0 : index
    %c0_19 = arith.constant 0 : index
    %39 = vector.load %arg4[%c0_16, %c0_17, %c0_18, %c0_19] : memref<3x4x32x8xbf16, #tpu.memory_space<vmem>>, vector<1x1x32x8xbf16>
    %40 = vector.shape_cast %39 : vector<1x1x32x8xbf16> to vector<32x8xbf16>
    %cst_20 = arith.constant dense<0.000000e+00> : vector<16x8xf32>
    %41 = tpu.matmul %36, %40, %cst_20 {dimension_numbers = #tpu.dot_dimension_numbers<[1], [0], [0], [1], [0, 0, 1, 1], [], []>} : vector<16x32xbf16>, vector<32x8xbf16>, vector<16x8xf32> -> vector<16x8xf32>
    %42 = vector.extract_strided_slice %37 {offsets = [0, 0, 0, 0], sizes = [1, 1, 1, 8], strides = [1, 1, 1, 1]} : vector<3x4x1x8xf32> to vector<1x1x1x8xf32>
    %43 = vector.shape_cast %42 : vector<1x1x1x8xf32> to vector<1x8xf32>
    %44 = vector.broadcast %43 : vector<1x8xf32> to vector<16x8xf32>
    %45 = arith.addf %41, %44 : vector<16x8xf32>
    %46 = vector.shape_cast %45 : vector<16x8xf32> to vector<2x8x8xf32>
    %c1 = arith.constant 1 : index
    %c0_21 = arith.constant 0 : index
    %c0_22 = arith.constant 0 : index
    %c0_23 = arith.constant 0 : index
    %47 = vector.load %arg4[%c1, %c0_21, %c0_22, %c0_23] : memref<3x4x32x8xbf16, #tpu.memory_space<vmem>>, vector<1x1x32x8xbf16>
    %48 = vector.shape_cast %47 : vector<1x1x32x8xbf16> to vector<32x8xbf16>
    %cst_24 = arith.constant dense<0.000000e+00> : vector<16x8xf32>
    %49 = tpu.matmul %36, %48, %cst_24 {dimension_numbers = #tpu.dot_dimension_numbers<[1], [0], [0], [1], [0, 0, 1, 1], [], []>} : vector<16x32xbf16>, vector<32x8xbf16>, vector<16x8xf32> -> vector<16x8xf32>
    %50 = vector.extract_strided_slice %37 {offsets = [1, 0, 0, 0], sizes = [1, 1, 1, 8], strides = [1, 1, 1, 1]} : vector<3x4x1x8xf32> to vector<1x1x1x8xf32>
    %51 = vector.shape_cast %50 : vector<1x1x1x8xf32> to vector<1x8xf32>
    %52 = vector.broadcast %51 : vector<1x8xf32> to vector<16x8xf32>
    %53 = arith.addf %49, %52 : vector<16x8xf32>
    %54 = vector.shape_cast %53 : vector<16x8xf32> to vector<2x8x8xf32>
    %c2 = arith.constant 2 : index
    %c0_25 = arith.constant 0 : index
    %c0_26 = arith.constant 0 : index
    %c0_27 = arith.constant 0 : index
    %55 = vector.load %arg4[%c2, %c0_25, %c0_26, %c0_27] : memref<3x4x32x8xbf16, #tpu.memory_space<vmem>>, vector<1x1x32x8xbf16>
    %56 = vector.shape_cast %55 : vector<1x1x32x8xbf16> to vector<32x8xbf16>
    %cst_28 = arith.constant dense<0.000000e+00> : vector<16x8xf32>
    %57 = tpu.matmul %36, %56, %cst_28 {dimension_numbers = #tpu.dot_dimension_numbers<[1], [0], [0], [1], [0, 0, 1, 1], [], []>} : vector<16x32xbf16>, vector<32x8xbf16>, vector<16x8xf32> -> vector<16x8xf32>
    %58 = vector.extract_strided_slice %37 {offsets = [2, 0, 0, 0], sizes = [1, 1, 1, 8], strides = [1, 1, 1, 1]} : vector<3x4x1x8xf32> to vector<1x1x1x8xf32>
    %59 = vector.shape_cast %58 : vector<1x1x1x8xf32> to vector<1x8xf32>
    %60 = vector.broadcast %59 : vector<1x8xf32> to vector<16x8xf32>
    %61 = arith.addf %57, %60 : vector<16x8xf32>
    %62 = vector.shape_cast %61 : vector<16x8xf32> to vector<2x8x8xf32>
    %63 = arith.truncf %46 : vector<2x8x8xf32> to vector<2x8x8xbf16>
    %64 = arith.truncf %54 : vector<2x8x8xf32> to vector<2x8x8xbf16>
    "tpu.trace_start"() <{level = 10 : i32, message = "bqd,bkd->bqk"}> : () -> ()
    %cst_29 = arith.constant dense<0.000000e+00> : vector<2x8x8xf32>
    %65 = tpu.matmul %63, %64, %cst_29 {dimension_numbers = #tpu.dot_dimension_numbers<[2], [2], [1], [1], [0, 0, 0, 1, 1, 1], [0], [0]>} : vector<2x8x8xbf16>, vector<2x8x8xbf16>, vector<2x8x8xf32> -> vector<2x8x8xf32>
    "tpu.trace_stop"() : () -> ()
    %cst_30 = arith.constant 0.353553385 : f32
    %66 = vector.broadcast %cst_30 : f32 to vector<2x8x8xf32>
    %67 = arith.mulf %65, %66 : vector<2x8x8xf32>
    %cst_31 = arith.constant dense<0xFF800000> : vector<2x8xf32>
    %68 = vector.multi_reduction <maximumf>, %67, %cst_31 [2] : vector<2x8x8xf32> to vector<2x8xf32>
    %69 = vector.shape_cast %68 : vector<2x8xf32> to vector<2x8x1xf32>
    %70 = vector.broadcast %69 : vector<2x8x1xf32> to vector<2x8x8xf32>
    %71 = arith.subf %67, %70 : vector<2x8x8xf32>
    %72 = math.exp %71 : vector<2x8x8xf32>
    %cst_32 = arith.constant dense<0.000000e+00> : vector<2x8xf32>
    %73 = vector.multi_reduction <add>, %72, %cst_32 [2] : vector<2x8x8xf32> to vector<2x8xf32>
    %74 = vector.shape_cast %73 : vector<2x8xf32> to vector<2x8x1xf32>
    %75 = vector.broadcast %74 : vector<2x8x1xf32> to vector<2x8x8xf32>
    %76 = arith.divf %72, %75 : vector<2x8x8xf32>
    %77 = arith.truncf %76 : vector<2x8x8xf32> to vector<2x8x8xbf16>
    %78 = arith.truncf %62 : vector<2x8x8xf32> to vector<2x8x8xbf16>
    "tpu.trace_start"() <{level = 10 : i32, message = "bqk,bkd->bqd"}> : () -> ()
    %cst_33 = arith.constant dense<0.000000e+00> : vector<2x8x8xf32>
    %79 = tpu.matmul %77, %78, %cst_33 {dimension_numbers = #tpu.dot_dimension_numbers<[2], [1], [1], [2], [0, 0, 0, 1, 1, 2], [0], [0]>} : vector<2x8x8xbf16>, vector<2x8x8xbf16>, vector<2x8x8xf32> -> vector<2x8x8xf32>
    "tpu.trace_stop"() : () -> ()
    %80 = vector.shape_cast %79 : vector<2x8x8xf32> to vector<16x8xf32>
    %81 = arith.truncf %80 : vector<16x8xf32> to vector<16x8xbf16>
    %c0_34 = arith.constant 0 : index
    %c0_35 = arith.constant 0 : index
    %c0_36 = arith.constant 0 : index
    %82 = vector.load %arg6[%c0_34, %c0_35, %c0_36] : memref<4x8x32xbf16, #tpu.memory_space<vmem>>, vector<1x8x32xbf16>
    %83 = vector.shape_cast %82 : vector<1x8x32xbf16> to vector<8x32xbf16>
    %cst_37 = arith.constant dense<0.000000e+00> : vector<16x32xf32>
    %84 = tpu.matmul %81, %83, %cst_37 {dimension_numbers = #tpu.dot_dimension_numbers<[1], [0], [0], [1], [0, 0, 1, 1], [], []>} : vector<16x8xbf16>, vector<8x32xbf16>, vector<16x32xf32> -> vector<16x32xf32>
    %85 = arith.addf %38, %84 : vector<16x32xf32>
    %c0_38 = arith.constant 0 : index
    %c1_39 = arith.constant 1 : index
    %c0_40 = arith.constant 0 : index
    %c0_41 = arith.constant 0 : index
    %86 = vector.load %arg4[%c0_38, %c1_39, %c0_40, %c0_41] : memref<3x4x32x8xbf16, #tpu.memory_space<vmem>>, vector<1x1x32x8xbf16>
    %87 = vector.shape_cast %86 : vector<1x1x32x8xbf16> to vector<32x8xbf16>
    %cst_42 = arith.constant dense<0.000000e+00> : vector<16x8xf32>
    %88 = tpu.matmul %36, %87, %cst_42 {dimension_numbers = #tpu.dot_dimension_numbers<[1], [0], [0], [1], [0, 0, 1, 1], [], []>} : vector<16x32xbf16>, vector<32x8xbf16>, vector<16x8xf32> -> vector<16x8xf32>
    %89 = vector.extract_strided_slice %37 {offsets = [0, 1, 0, 0], sizes = [1, 1, 1, 8], strides = [1, 1, 1, 1]} : vector<3x4x1x8xf32> to vector<1x1x1x8xf32>
    %90 = vector.shape_cast %89 : vector<1x1x1x8xf32> to vector<1x8xf32>
    %91 = vector.broadcast %90 : vector<1x8xf32> to vector<16x8xf32>
    %92 = arith.addf %88, %91 : vector<16x8xf32>
    %93 = vector.shape_cast %92 : vector<16x8xf32> to vector<2x8x8xf32>
    %c1_43 = arith.constant 1 : index
    %c1_44 = arith.constant 1 : index
    %c0_45 = arith.constant 0 : index
    %c0_46 = arith.constant 0 : index
    %94 = vector.load %arg4[%c1_43, %c1_44, %c0_45, %c0_46] : memref<3x4x32x8xbf16, #tpu.memory_space<vmem>>, vector<1x1x32x8xbf16>
    %95 = vector.shape_cast %94 : vector<1x1x32x8xbf16> to vector<32x8xbf16>
    %cst_47 = arith.constant dense<0.000000e+00> : vector<16x8xf32>
    %96 = tpu.matmul %36, %95, %cst_47 {dimension_numbers = #tpu.dot_dimension_numbers<[1], [0], [0], [1], [0, 0, 1, 1], [], []>} : vector<16x32xbf16>, vector<32x8xbf16>, vector<16x8xf32> -> vector<16x8xf32>
    %97 = vector.extract_strided_slice %37 {offsets = [1, 1, 0, 0], sizes = [1, 1, 1, 8], strides = [1, 1, 1, 1]} : vector<3x4x1x8xf32> to vector<1x1x1x8xf32>
    %98 = vector.shape_cast %97 : vector<1x1x1x8xf32> to vector<1x8xf32>
    %99 = vector.broadcast %98 : vector<1x8xf32> to vector<16x8xf32>
    %100 = arith.addf %96, %99 : vector<16x8xf32>
    %101 = vector.shape_cast %100 : vector<16x8xf32> to vector<2x8x8xf32>
    %c2_48 = arith.constant 2 : index
    %c1_49 = arith.constant 1 : index
    %c0_50 = arith.constant 0 : index
    %c0_51 = arith.constant 0 : index
    %102 = vector.load %arg4[%c2_48, %c1_49, %c0_50, %c0_51] : memref<3x4x32x8xbf16, #tpu.memory_space<vmem>>, vector<1x1x32x8xbf16>
    %103 = vector.shape_cast %102 : vector<1x1x32x8xbf16> to vector<32x8xbf16>
    %cst_52 = arith.constant dense<0.000000e+00> : vector<16x8xf32>
    %104 = tpu.matmul %36, %103, %cst_52 {dimension_numbers = #tpu.dot_dimension_numbers<[1], [0], [0], [1], [0, 0, 1, 1], [], []>} : vector<16x32xbf16>, vector<32x8xbf16>, vector<16x8xf32> -> vector<16x8xf32>
    %105 = vector.extract_strided_slice %37 {offsets = [2, 1, 0, 0], sizes = [1, 1, 1, 8], strides = [1, 1, 1, 1]} : vector<3x4x1x8xf32> to vector<1x1x1x8xf32>
    %106 = vector.shape_cast %105 : vector<1x1x1x8xf32> to vector<1x8xf32>
    %107 = vector.broadcast %106 : vector<1x8xf32> to vector<16x8xf32>
    %108 = arith.addf %104, %107 : vector<16x8xf32>
    %109 = vector.shape_cast %108 : vector<16x8xf32> to vector<2x8x8xf32>
    %110 = arith.truncf %93 : vector<2x8x8xf32> to vector<2x8x8xbf16>
    %111 = arith.truncf %101 : vector<2x8x8xf32> to vector<2x8x8xbf16>
    "tpu.trace_start"() <{level = 10 : i32, message = "bqd,bkd->bqk"}> : () -> ()
    %cst_53 = arith.constant dense<0.000000e+00> : vector<2x8x8xf32>
    %112 = tpu.matmul %110, %111, %cst_53 {dimension_numbers = #tpu.dot_dimension_numbers<[2], [2], [1], [1], [0, 0, 0, 1, 1, 1], [0], [0]>} : vector<2x8x8xbf16>, vector<2x8x8xbf16>, vector<2x8x8xf32> -> vector<2x8x8xf32>
    "tpu.trace_stop"() : () -> ()
    %cst_54 = arith.constant 0.353553385 : f32
    %113 = vector.broadcast %cst_54 : f32 to vector<2x8x8xf32>
    %114 = arith.mulf %112, %113 : vector<2x8x8xf32>
    %cst_55 = arith.constant dense<0xFF800000> : vector<2x8xf32>
    %115 = vector.multi_reduction <maximumf>, %114, %cst_55 [2] : vector<2x8x8xf32> to vector<2x8xf32>
    %116 = vector.shape_cast %115 : vector<2x8xf32> to vector<2x8x1xf32>
    %117 = vector.broadcast %116 : vector<2x8x1xf32> to vector<2x8x8xf32>
    %118 = arith.subf %114, %117 : vector<2x8x8xf32>
    %119 = math.exp %118 : vector<2x8x8xf32>
    %cst_56 = arith.constant dense<0.000000e+00> : vector<2x8xf32>
    %120 = vector.multi_reduction <add>, %119, %cst_56 [2] : vector<2x8x8xf32> to vector<2x8xf32>
    %121 = vector.shape_cast %120 : vector<2x8xf32> to vector<2x8x1xf32>
    %122 = vector.broadcast %121 : vector<2x8x1xf32> to vector<2x8x8xf32>
    %123 = arith.divf %119, %122 : vector<2x8x8xf32>
    %124 = arith.truncf %123 : vector<2x8x8xf32> to vector<2x8x8xbf16>
    %125 = arith.truncf %109 : vector<2x8x8xf32> to vector<2x8x8xbf16>
    "tpu.trace_start"() <{level = 10 : i32, message = "bqk,bkd->bqd"}> : () -> ()
    %cst_57 = arith.constant dense<0.000000e+00> : vector<2x8x8xf32>
    %126 = tpu.matmul %124, %125, %cst_57 {dimension_numbers = #tpu.dot_dimension_numbers<[2], [1], [1], [2], [0, 0, 0, 1, 1, 2], [0], [0]>} : vector<2x8x8xbf16>, vector<2x8x8xbf16>, vector<2x8x8xf32> -> vector<2x8x8xf32>
    "tpu.trace_stop"() : () -> ()
    %127 = vector.shape_cast %126 : vector<2x8x8xf32> to vector<16x8xf32>
    %128 = arith.truncf %127 : vector<16x8xf32> to vector<16x8xbf16>
    %c1_58 = arith.constant 1 : index
    %c0_59 = arith.constant 0 : index
    %c0_60 = arith.constant 0 : index
    %129 = vector.load %arg6[%c1_58, %c0_59, %c0_60] : memref<4x8x32xbf16, #tpu.memory_space<vmem>>, vector<1x8x32xbf16>
    %130 = vector.shape_cast %129 : vector<1x8x32xbf16> to vector<8x32xbf16>
    %cst_61 = arith.constant dense<0.000000e+00> : vector<16x32xf32>
    %131 = tpu.matmul %128, %130, %cst_61 {dimension_numbers = #tpu.dot_dimension_numbers<[1], [0], [0], [1], [0, 0, 1, 1], [], []>} : vector<16x8xbf16>, vector<8x32xbf16>, vector<16x32xf32> -> vector<16x32xf32>
    %132 = arith.addf %85, %131 : vector<16x32xf32>
    %c0_62 = arith.constant 0 : index
    %c2_63 = arith.constant 2 : index
    %c0_64 = arith.constant 0 : index
    %c0_65 = arith.constant 0 : index
    %133 = vector.load %arg4[%c0_62, %c2_63, %c0_64, %c0_65] : memref<3x4x32x8xbf16, #tpu.memory_space<vmem>>, vector<1x1x32x8xbf16>
    %134 = vector.shape_cast %133 : vector<1x1x32x8xbf16> to vector<32x8xbf16>
    %cst_66 = arith.constant dense<0.000000e+00> : vector<16x8xf32>
    %135 = tpu.matmul %36, %134, %cst_66 {dimension_numbers = #tpu.dot_dimension_numbers<[1], [0], [0], [1], [0, 0, 1, 1], [], []>} : vector<16x32xbf16>, vector<32x8xbf16>, vector<16x8xf32> -> vector<16x8xf32>
    %136 = vector.extract_strided_slice %37 {offsets = [0, 2, 0, 0], sizes = [1, 1, 1, 8], strides = [1, 1, 1, 1]} : vector<3x4x1x8xf32> to vector<1x1x1x8xf32>
    %137 = vector.shape_cast %136 : vector<1x1x1x8xf32> to vector<1x8xf32>
    %138 = vector.broadcast %137 : vector<1x8xf32> to vector<16x8xf32>
    %139 = arith.addf %135, %138 : vector<16x8xf32>
    %140 = vector.shape_cast %139 : vector<16x8xf32> to vector<2x8x8xf32>
    %c1_67 = arith.constant 1 : index
    %c2_68 = arith.constant 2 : index
    %c0_69 = arith.constant 0 : index
    %c0_70 = arith.constant 0 : index
    %141 = vector.load %arg4[%c1_67, %c2_68, %c0_69, %c0_70] : memref<3x4x32x8xbf16, #tpu.memory_space<vmem>>, vector<1x1x32x8xbf16>
    %142 = vector.shape_cast %141 : vector<1x1x32x8xbf16> to vector<32x8xbf16>
    %cst_71 = arith.constant dense<0.000000e+00> : vector<16x8xf32>
    %143 = tpu.matmul %36, %142, %cst_71 {dimension_numbers = #tpu.dot_dimension_numbers<[1], [0], [0], [1], [0, 0, 1, 1], [], []>} : vector<16x32xbf16>, vector<32x8xbf16>, vector<16x8xf32> -> vector<16x8xf32>
    %144 = vector.extract_strided_slice %37 {offsets = [1, 2, 0, 0], sizes = [1, 1, 1, 8], strides = [1, 1, 1, 1]} : vector<3x4x1x8xf32> to vector<1x1x1x8xf32>
    %145 = vector.shape_cast %144 : vector<1x1x1x8xf32> to vector<1x8xf32>
    %146 = vector.broadcast %145 : vector<1x8xf32> to vector<16x8xf32>
    %147 = arith.addf %143, %146 : vector<16x8xf32>
    %148 = vector.shape_cast %147 : vector<16x8xf32> to vector<2x8x8xf32>
    %c2_72 = arith.constant 2 : index
    %c2_73 = arith.constant 2 : index
    %c0_74 = arith.constant 0 : index
    %c0_75 = arith.constant 0 : index
    %149 = vector.load %arg4[%c2_72, %c2_73, %c0_74, %c0_75] : memref<3x4x32x8xbf16, #tpu.memory_space<vmem>>, vector<1x1x32x8xbf16>
    %150 = vector.shape_cast %149 : vector<1x1x32x8xbf16> to vector<32x8xbf16>
    %cst_76 = arith.constant dense<0.000000e+00> : vector<16x8xf32>
    %151 = tpu.matmul %36, %150, %cst_76 {dimension_numbers = #tpu.dot_dimension_numbers<[1], [0], [0], [1], [0, 0, 1, 1], [], []>} : vector<16x32xbf16>, vector<32x8xbf16>, vector<16x8xf32> -> vector<16x8xf32>
    %152 = vector.extract_strided_slice %37 {offsets = [2, 2, 0, 0], sizes = [1, 1, 1, 8], strides = [1, 1, 1, 1]} : vector<3x4x1x8xf32> to vector<1x1x1x8xf32>
    %153 = vector.shape_cast %152 : vector<1x1x1x8xf32> to vector<1x8xf32>
    %154 = vector.broadcast %153 : vector<1x8xf32> to vector<16x8xf32>
    %155 = arith.addf %151, %154 : vector<16x8xf32>
    %156 = vector.shape_cast %155 : vector<16x8xf32> to vector<2x8x8xf32>
    %157 = arith.truncf %140 : vector<2x8x8xf32> to vector<2x8x8xbf16>
    %158 = arith.truncf %148 : vector<2x8x8xf32> to vector<2x8x8xbf16>
    "tpu.trace_start"() <{level = 10 : i32, message = "bqd,bkd->bqk"}> : () -> ()
    %cst_77 = arith.constant dense<0.000000e+00> : vector<2x8x8xf32>
    %159 = tpu.matmul %157, %158, %cst_77 {dimension_numbers = #tpu.dot_dimension_numbers<[2], [2], [1], [1], [0, 0, 0, 1, 1, 1], [0], [0]>} : vector<2x8x8xbf16>, vector<2x8x8xbf16>, vector<2x8x8xf32> -> vector<2x8x8xf32>
    "tpu.trace_stop"() : () -> ()
    %cst_78 = arith.constant 0.353553385 : f32
    %160 = vector.broadcast %cst_78 : f32 to vector<2x8x8xf32>
    %161 = arith.mulf %159, %160 : vector<2x8x8xf32>
    %cst_79 = arith.constant dense<0xFF800000> : vector<2x8xf32>
    %162 = vector.multi_reduction <maximumf>, %161, %cst_79 [2] : vector<2x8x8xf32> to vector<2x8xf32>
    %163 = vector.shape_cast %162 : vector<2x8xf32> to vector<2x8x1xf32>
    %164 = vector.broadcast %163 : vector<2x8x1xf32> to vector<2x8x8xf32>
    %165 = arith.subf %161, %164 : vector<2x8x8xf32>
    %166 = math.exp %165 : vector<2x8x8xf32>
    %cst_80 = arith.constant dense<0.000000e+00> : vector<2x8xf32>
    %167 = vector.multi_reduction <add>, %166, %cst_80 [2] : vector<2x8x8xf32> to vector<2x8xf32>
    %168 = vector.shape_cast %167 : vector<2x8xf32> to vector<2x8x1xf32>
    %169 = vector.broadcast %168 : vector<2x8x1xf32> to vector<2x8x8xf32>
    %170 = arith.divf %166, %169 : vector<2x8x8xf32>
    %171 = arith.truncf %170 : vector<2x8x8xf32> to vector<2x8x8xbf16>
    %172 = arith.truncf %156 : vector<2x8x8xf32> to vector<2x8x8xbf16>
    "tpu.trace_start"() <{level = 10 : i32, message = "bqk,bkd->bqd"}> : () -> ()
    %cst_81 = arith.constant dense<0.000000e+00> : vector<2x8x8xf32>
    %173 = tpu.matmul %171, %172, %cst_81 {dimension_numbers = #tpu.dot_dimension_numbers<[2], [1], [1], [2], [0, 0, 0, 1, 1, 2], [0], [0]>} : vector<2x8x8xbf16>, vector<2x8x8xbf16>, vector<2x8x8xf32> -> vector<2x8x8xf32>
    "tpu.trace_stop"() : () -> ()
    %174 = vector.shape_cast %173 : vector<2x8x8xf32> to vector<16x8xf32>
    %175 = arith.truncf %174 : vector<16x8xf32> to vector<16x8xbf16>
    %c2_82 = arith.constant 2 : index
    %c0_83 = arith.constant 0 : index
    %c0_84 = arith.constant 0 : index
    %176 = vector.load %arg6[%c2_82, %c0_83, %c0_84] : memref<4x8x32xbf16, #tpu.memory_space<vmem>>, vector<1x8x32xbf16>
    %177 = vector.shape_cast %176 : vector<1x8x32xbf16> to vector<8x32xbf16>
    %cst_85 = arith.constant dense<0.000000e+00> : vector<16x32xf32>
    %178 = tpu.matmul %175, %177, %cst_85 {dimension_numbers = #tpu.dot_dimension_numbers<[1], [0], [0], [1], [0, 0, 1, 1], [], []>} : vector<16x8xbf16>, vector<8x32xbf16>, vector<16x32xf32> -> vector<16x32xf32>
    %179 = arith.addf %132, %178 : vector<16x32xf32>
    %c0_86 = arith.constant 0 : index
    %c3 = arith.constant 3 : index
    %c0_87 = arith.constant 0 : index
    %c0_88 = arith.constant 0 : index
    %180 = vector.load %arg4[%c0_86, %c3, %c0_87, %c0_88] : memref<3x4x32x8xbf16, #tpu.memory_space<vmem>>, vector<1x1x32x8xbf16>
    %181 = vector.shape_cast %180 : vector<1x1x32x8xbf16> to vector<32x8xbf16>
    %cst_89 = arith.constant dense<0.000000e+00> : vector<16x8xf32>
    %182 = tpu.matmul %36, %181, %cst_89 {dimension_numbers = #tpu.dot_dimension_numbers<[1], [0], [0], [1], [0, 0, 1, 1], [], []>} : vector<16x32xbf16>, vector<32x8xbf16>, vector<16x8xf32> -> vector<16x8xf32>
    %183 = vector.extract_strided_slice %37 {offsets = [0, 3, 0, 0], sizes = [1, 1, 1, 8], strides = [1, 1, 1, 1]} : vector<3x4x1x8xf32> to vector<1x1x1x8xf32>
    %184 = vector.shape_cast %183 : vector<1x1x1x8xf32> to vector<1x8xf32>
    %185 = vector.broadcast %184 : vector<1x8xf32> to vector<16x8xf32>
    %186 = arith.addf %182, %185 : vector<16x8xf32>
    %187 = vector.shape_cast %186 : vector<16x8xf32> to vector<2x8x8xf32>
    %c1_90 = arith.constant 1 : index
    %c3_91 = arith.constant 3 : index
    %c0_92 = arith.constant 0 : index
    %c0_93 = arith.constant 0 : index
    %188 = vector.load %arg4[%c1_90, %c3_91, %c0_92, %c0_93] : memref<3x4x32x8xbf16, #tpu.memory_space<vmem>>, vector<1x1x32x8xbf16>
    %189 = vector.shape_cast %188 : vector<1x1x32x8xbf16> to vector<32x8xbf16>
    %cst_94 = arith.constant dense<0.000000e+00> : vector<16x8xf32>
    %190 = tpu.matmul %36, %189, %cst_94 {dimension_numbers = #tpu.dot_dimension_numbers<[1], [0], [0], [1], [0, 0, 1, 1], [], []>} : vector<16x32xbf16>, vector<32x8xbf16>, vector<16x8xf32> -> vector<16x8xf32>
    %191 = vector.extract_strided_slice %37 {offsets = [1, 3, 0, 0], sizes = [1, 1, 1, 8], strides = [1, 1, 1, 1]} : vector<3x4x1x8xf32> to vector<1x1x1x8xf32>
    %192 = vector.shape_cast %191 : vector<1x1x1x8xf32> to vector<1x8xf32>
    %193 = vector.broadcast %192 : vector<1x8xf32> to vector<16x8xf32>
    %194 = arith.addf %190, %193 : vector<16x8xf32>
    %195 = vector.shape_cast %194 : vector<16x8xf32> to vector<2x8x8xf32>
    %c2_95 = arith.constant 2 : index
    %c3_96 = arith.constant 3 : index
    %c0_97 = arith.constant 0 : index
    %c0_98 = arith.constant 0 : index
    %196 = vector.load %arg4[%c2_95, %c3_96, %c0_97, %c0_98] : memref<3x4x32x8xbf16, #tpu.memory_space<vmem>>, vector<1x1x32x8xbf16>
    %197 = vector.shape_cast %196 : vector<1x1x32x8xbf16> to vector<32x8xbf16>
    %cst_99 = arith.constant dense<0.000000e+00> : vector<16x8xf32>
    %198 = tpu.matmul %36, %197, %cst_99 {dimension_numbers = #tpu.dot_dimension_numbers<[1], [0], [0], [1], [0, 0, 1, 1], [], []>} : vector<16x32xbf16>, vector<32x8xbf16>, vector<16x8xf32> -> vector<16x8xf32>
    %199 = vector.extract_strided_slice %37 {offsets = [2, 3, 0, 0], sizes = [1, 1, 1, 8], strides = [1, 1, 1, 1]} : vector<3x4x1x8xf32> to vector<1x1x1x8xf32>
    %200 = vector.shape_cast %199 : vector<1x1x1x8xf32> to vector<1x8xf32>
    %201 = vector.broadcast %200 : vector<1x8xf32> to vector<16x8xf32>
    %202 = arith.addf %198, %201 : vector<16x8xf32>
    %203 = vector.shape_cast %202 : vector<16x8xf32> to vector<2x8x8xf32>
    %204 = arith.truncf %187 : vector<2x8x8xf32> to vector<2x8x8xbf16>
    %205 = arith.truncf %195 : vector<2x8x8xf32> to vector<2x8x8xbf16>
    "tpu.trace_start"() <{level = 10 : i32, message = "bqd,bkd->bqk"}> : () -> ()
    %cst_100 = arith.constant dense<0.000000e+00> : vector<2x8x8xf32>
    %206 = tpu.matmul %204, %205, %cst_100 {dimension_numbers = #tpu.dot_dimension_numbers<[2], [2], [1], [1], [0, 0, 0, 1, 1, 1], [0], [0]>} : vector<2x8x8xbf16>, vector<2x8x8xbf16>, vector<2x8x8xf32> -> vector<2x8x8xf32>
    "tpu.trace_stop"() : () -> ()
    %cst_101 = arith.constant 0.353553385 : f32
    %207 = vector.broadcast %cst_101 : f32 to vector<2x8x8xf32>
    %208 = arith.mulf %206, %207 : vector<2x8x8xf32>
    %cst_102 = arith.constant dense<0xFF800000> : vector<2x8xf32>
    %209 = vector.multi_reduction <maximumf>, %208, %cst_102 [2] : vector<2x8x8xf32> to vector<2x8xf32>
    %210 = vector.shape_cast %209 : vector<2x8xf32> to vector<2x8x1xf32>
    %211 = vector.broadcast %210 : vector<2x8x1xf32> to vector<2x8x8xf32>
    %212 = arith.subf %208, %211 : vector<2x8x8xf32>
    %213 = math.exp %212 : vector<2x8x8xf32>
    %cst_103 = arith.constant dense<0.000000e+00> : vector<2x8xf32>
    %214 = vector.multi_reduction <add>, %213, %cst_103 [2] : vector<2x8x8xf32> to vector<2x8xf32>
    %215 = vector.shape_cast %214 : vector<2x8xf32> to vector<2x8x1xf32>
    %216 = vector.broadcast %215 : vector<2x8x1xf32> to vector<2x8x8xf32>
    %217 = arith.divf %213, %216 : vector<2x8x8xf32>
    %218 = arith.truncf %217 : vector<2x8x8xf32> to vector<2x8x8xbf16>
    %219 = arith.truncf %203 : vector<2x8x8xf32> to vector<2x8x8xbf16>
    "tpu.trace_start"() <{level = 10 : i32, message = "bqk,bkd->bqd"}> : () -> ()
    %cst_104 = arith.constant dense<0.000000e+00> : vector<2x8x8xf32>
    %220 = tpu.matmul %218, %219, %cst_104 {dimension_numbers = #tpu.dot_dimension_numbers<[2], [1], [1], [2], [0, 0, 0, 1, 1, 2], [0], [0]>} : vector<2x8x8xbf16>, vector<2x8x8xbf16>, vector<2x8x8xf32> -> vector<2x8x8xf32>
    "tpu.trace_stop"() : () -> ()
    %221 = vector.shape_cast %220 : vector<2x8x8xf32> to vector<16x8xf32>
    %222 = arith.truncf %221 : vector<16x8xf32> to vector<16x8xbf16>
    %c3_105 = arith.constant 3 : index
    %c0_106 = arith.constant 0 : index
    %c0_107 = arith.constant 0 : index
    %223 = vector.load %arg6[%c3_105, %c0_106, %c0_107] : memref<4x8x32xbf16, #tpu.memory_space<vmem>>, vector<1x8x32xbf16>
    %224 = vector.shape_cast %223 : vector<1x8x32xbf16> to vector<8x32xbf16>
    %cst_108 = arith.constant dense<0.000000e+00> : vector<16x32xf32>
    %225 = tpu.matmul %222, %224, %cst_108 {dimension_numbers = #tpu.dot_dimension_numbers<[1], [0], [0], [1], [0, 0, 1, 1], [], []>} : vector<16x8xbf16>, vector<8x32xbf16>, vector<16x32xf32> -> vector<16x32xf32>
    %226 = arith.addf %179, %225 : vector<16x32xf32>
    %227 = arith.addf %9, %226 : vector<16x32xf32>
    %228 = vector.extract_strided_slice %0 {offsets = [6, 0], sizes = [1, 32], strides = [1, 1]} : vector<16x32xf32> to vector<1x32xf32>
    %229 = vector.broadcast %228 : vector<1x32xf32> to vector<16x32xf32>
    %230 = arith.addf %227, %229 : vector<16x32xf32>
    %231 = vector.extract_strided_slice %0 {offsets = [4, 0], sizes = [1, 32], strides = [1, 1]} : vector<16x32xf32> to vector<1x32xf32>
    %232 = vector.extract_strided_slice %0 {offsets = [5, 0], sizes = [1, 32], strides = [1, 1]} : vector<16x32xf32> to vector<1x32xf32>
    %cst_109 = arith.constant dense<0.000000e+00> : vector<16xf32>
    %233 = vector.multi_reduction <add>, %230, %cst_109 [1] : vector<16x32xf32> to vector<16xf32>
    %234 = vector.shape_cast %233 : vector<16xf32> to vector<16x1xf32>
    %cst_110 = arith.constant 3.200000e+01 : f32
    %235 = vector.broadcast %cst_110 : f32 to vector<16x1xf32>
    %236 = arith.divf %234, %235 : vector<16x1xf32>
    %237 = vector.broadcast %236 : vector<16x1xf32> to vector<16x32xf32>
    %238 = arith.subf %230, %237 : vector<16x32xf32>
    %239 = arith.mulf %238, %238 : vector<16x32xf32>
    %cst_111 = arith.constant dense<0.000000e+00> : vector<16xf32>
    %240 = vector.multi_reduction <add>, %239, %cst_111 [1] : vector<16x32xf32> to vector<16xf32>
    %241 = vector.shape_cast %240 : vector<16xf32> to vector<16x1xf32>
    %cst_112 = arith.constant 3.200000e+01 : f32
    %242 = vector.broadcast %cst_112 : f32 to vector<16x1xf32>
    %243 = arith.divf %241, %242 : vector<16x1xf32>
    %cst_113 = arith.constant 9.99999974E-6 : f32
    %244 = vector.broadcast %cst_113 : f32 to vector<16x1xf32>
    %245 = arith.addf %243, %244 : vector<16x1xf32>
    %246 = math.rsqrt %245 : vector<16x1xf32>
    %247 = vector.broadcast %246 : vector<16x1xf32> to vector<16x32xf32>
    %248 = arith.mulf %238, %247 : vector<16x32xf32>
    %249 = vector.broadcast %231 : vector<1x32xf32> to vector<16x32xf32>
    %250 = arith.mulf %248, %249 : vector<16x32xf32>
    %251 = vector.broadcast %232 : vector<1x32xf32> to vector<16x32xf32>
    %252 = arith.addf %250, %251 : vector<16x32xf32>
    %253 = arith.truncf %252 : vector<16x32xf32> to vector<16x32xbf16>
    %c0_114 = arith.constant 0 : index
    %c0_115 = arith.constant 0 : index
    %254 = vector.load %arg7[%c0_114, %c0_115] : memref<32x32xbf16, #tpu.memory_space<vmem>>, vector<32x32xbf16>
    %cst_116 = arith.constant dense<0.000000e+00> : vector<16x32xf32>
    %255 = tpu.matmul %253, %254, %cst_116 {dimension_numbers = #tpu.dot_dimension_numbers<[1], [0], [0], [1], [0, 0, 1, 1], [], []>} : vector<16x32xbf16>, vector<32x32xbf16>, vector<16x32xf32> -> vector<16x32xf32>
    %256 = vector.extract_strided_slice %0 {offsets = [7, 0], sizes = [1, 32], strides = [1, 1]} : vector<16x32xf32> to vector<1x32xf32>
    %257 = vector.broadcast %256 : vector<1x32xf32> to vector<16x32xf32>
    %258 = arith.addf %255, %257 : vector<16x32xf32>
    %cst_117 = arith.constant 0.000000e+00 : f32
    %259 = vector.broadcast %cst_117 : f32 to vector<16x32xf32>
    %260 = arith.maximumf %258, %259 : vector<16x32xf32>
    %261 = arith.truncf %260 : vector<16x32xf32> to vector<16x32xbf16>
    %c0_118 = arith.constant 0 : index
    %c0_119 = arith.constant 0 : index
    %262 = vector.load %arg8[%c0_118, %c0_119] : memref<32x32xbf16, #tpu.memory_space<vmem>>, vector<32x32xbf16>
    %cst_120 = arith.constant dense<0.000000e+00> : vector<16x32xf32>
    %263 = tpu.matmul %261, %262, %cst_120 {dimension_numbers = #tpu.dot_dimension_numbers<[1], [0], [0], [1], [0, 0, 1, 1], [], []>} : vector<16x32xbf16>, vector<32x32xbf16>, vector<16x32xf32> -> vector<16x32xf32>
    %264 = vector.extract_strided_slice %0 {offsets = [8, 0], sizes = [1, 32], strides = [1, 1]} : vector<16x32xf32> to vector<1x32xf32>
    %265 = vector.broadcast %264 : vector<1x32xf32> to vector<16x32xf32>
    %266 = arith.addf %263, %265 : vector<16x32xf32>
    %267 = arith.addf %230, %266 : vector<16x32xf32>
    %268 = tpu.iota {dimensions = array<i32: 1>} : vector<2x8x32xi32>
    %269 = vector.shape_cast %268 : vector<2x8x32xi32> to vector<16x32xi32>
    %270 = arith.truncf %13 : vector<16x32xf32> to vector<16x32xbf16>
    %c1_i32 = arith.constant 1 : i32
    %271 = vector.broadcast %c1_i32 : i32 to vector<16x32xi32>
    %272 = arith.cmpi sge, %269, %271 : vector<16x32xi32>
    %c1_i32_121 = arith.constant 1 : i32
    %273 = tpu.dynamic_rotate %13 by %c1_i32_121 dim 0 : vector<16x32xf32>, i32 -> vector<16x32xf32>
    %cst_122 = arith.constant 0.000000e+00 : f32
    %274 = vector.broadcast %cst_122 : f32 to vector<16x32xf32>
    %275 = arith.select %272, %273, %274 : vector<16x32xi1>, vector<16x32xf32>
    %c7_i32 = arith.constant 7 : i32
    %276 = vector.broadcast %c7_i32 : i32 to vector<16x32xi32>
    %277 = arith.cmpi slt, %269, %276 : vector<16x32xi32>
    %c15_i32 = arith.constant 15 : i32
    %278 = tpu.dynamic_rotate %13 by %c15_i32 dim 0 : vector<16x32xf32>, i32 -> vector<16x32xf32>
    %cst_123 = arith.constant 0.000000e+00 : f32
    %279 = vector.broadcast %cst_123 : f32 to vector<16x32xf32>
    %280 = arith.select %277, %278, %279 : vector<16x32xi1>, vector<16x32xf32>
    %281 = arith.truncf %275 : vector<16x32xf32> to vector<16x32xbf16>
    %282 = arith.truncf %280 : vector<16x32xf32> to vector<16x32xbf16>
    %283 = tpu.concatenate %281, %270, %282 in 1 : vector<16x32xbf16>, vector<16x32xbf16>, vector<16x32xbf16> -> vector<16x96xbf16>
    %c0_124 = arith.constant 0 : index
    %c0_125 = arith.constant 0 : index
    %c0_126 = arith.constant 0 : index
    %284 = vector.load %arg9[%c0_124, %c0_125, %c0_126] : memref<3x96x32xbf16, #tpu.memory_space<vmem>>, vector<1x96x32xbf16>
    %285 = vector.shape_cast %284 : vector<1x96x32xbf16> to vector<96x32xbf16>
    %cst_127 = arith.constant dense<0.000000e+00> : vector<16x32xf32>
    %286 = tpu.matmul %283, %285, %cst_127 {dimension_numbers = #tpu.dot_dimension_numbers<[1], [0], [0], [1], [0, 0, 1, 1], [], []>} : vector<16x96xbf16>, vector<96x32xbf16>, vector<16x32xf32> -> vector<16x32xf32>
    %c0_128 = arith.constant 0 : index
    %c0_129 = arith.constant 0 : index
    %c0_130 = arith.constant 0 : index
    %287 = vector.load %arg10[%c0_128, %c0_129, %c0_130] : memref<3x1x32xf32, #tpu.memory_space<vmem>>, vector<1x1x32xf32>
    %288 = vector.shape_cast %287 : vector<1x1x32xf32> to vector<1x32xf32>
    %289 = vector.broadcast %288 : vector<1x32xf32> to vector<16x32xf32>
    %290 = arith.mulf %286, %289 : vector<16x32xf32>
    %c0_131 = arith.constant 0 : index
    %c0_132 = arith.constant 0 : index
    %c0_133 = arith.constant 0 : index
    %291 = vector.load %arg11[%c0_131, %c0_132, %c0_133] : memref<3x1x32xf32, #tpu.memory_space<vmem>>, vector<1x1x32xf32>
    %292 = vector.shape_cast %291 : vector<1x1x32xf32> to vector<1x32xf32>
    %293 = vector.broadcast %292 : vector<1x32xf32> to vector<16x32xf32>
    %294 = arith.addf %290, %293 : vector<16x32xf32>
    %cst_134 = arith.constant 0.000000e+00 : f32
    %295 = vector.broadcast %cst_134 : f32 to vector<16x32xf32>
    %296 = arith.maximumf %294, %295 : vector<16x32xf32>
    %297 = arith.addf %296, %13 : vector<16x32xf32>
    %c2_i32 = arith.constant 2 : i32
    %298 = vector.broadcast %c2_i32 : i32 to vector<16x32xi32>
    %299 = arith.cmpi sge, %269, %298 : vector<16x32xi32>
    %c2_i32_135 = arith.constant 2 : i32
    %300 = tpu.dynamic_rotate %13 by %c2_i32_135 dim 0 : vector<16x32xf32>, i32 -> vector<16x32xf32>
    %cst_136 = arith.constant 0.000000e+00 : f32
    %301 = vector.broadcast %cst_136 : f32 to vector<16x32xf32>
    %302 = arith.select %299, %300, %301 : vector<16x32xi1>, vector<16x32xf32>
    %c6_i32 = arith.constant 6 : i32
    %303 = vector.broadcast %c6_i32 : i32 to vector<16x32xi32>
    %304 = arith.cmpi slt, %269, %303 : vector<16x32xi32>
    %c14_i32 = arith.constant 14 : i32
    %305 = tpu.dynamic_rotate %13 by %c14_i32 dim 0 : vector<16x32xf32>, i32 -> vector<16x32xf32>
    %cst_137 = arith.constant 0.000000e+00 : f32
    %306 = vector.broadcast %cst_137 : f32 to vector<16x32xf32>
    %307 = arith.select %304, %305, %306 : vector<16x32xi1>, vector<16x32xf32>
    %308 = arith.truncf %302 : vector<16x32xf32> to vector<16x32xbf16>
    %309 = arith.truncf %307 : vector<16x32xf32> to vector<16x32xbf16>
    %310 = tpu.concatenate %308, %270, %309 in 1 : vector<16x32xbf16>, vector<16x32xbf16>, vector<16x32xbf16> -> vector<16x96xbf16>
    %c1_138 = arith.constant 1 : index
    %c0_139 = arith.constant 0 : index
    %c0_140 = arith.constant 0 : index
    %311 = vector.load %arg9[%c1_138, %c0_139, %c0_140] : memref<3x96x32xbf16, #tpu.memory_space<vmem>>, vector<1x96x32xbf16>
    %312 = vector.shape_cast %311 : vector<1x96x32xbf16> to vector<96x32xbf16>
    %cst_141 = arith.constant dense<0.000000e+00> : vector<16x32xf32>
    %313 = tpu.matmul %310, %312, %cst_141 {dimension_numbers = #tpu.dot_dimension_numbers<[1], [0], [0], [1], [0, 0, 1, 1], [], []>} : vector<16x96xbf16>, vector<96x32xbf16>, vector<16x32xf32> -> vector<16x32xf32>
    %c1_142 = arith.constant 1 : index
    %c0_143 = arith.constant 0 : index
    %c0_144 = arith.constant 0 : index
    %314 = vector.load %arg10[%c1_142, %c0_143, %c0_144] : memref<3x1x32xf32, #tpu.memory_space<vmem>>, vector<1x1x32xf32>
    %315 = vector.shape_cast %314 : vector<1x1x32xf32> to vector<1x32xf32>
    %316 = vector.broadcast %315 : vector<1x32xf32> to vector<16x32xf32>
    %317 = arith.mulf %313, %316 : vector<16x32xf32>
    %c1_145 = arith.constant 1 : index
    %c0_146 = arith.constant 0 : index
    %c0_147 = arith.constant 0 : index
    %318 = vector.load %arg11[%c1_145, %c0_146, %c0_147] : memref<3x1x32xf32, #tpu.memory_space<vmem>>, vector<1x1x32xf32>
    %319 = vector.shape_cast %318 : vector<1x1x32xf32> to vector<1x32xf32>
    %320 = vector.broadcast %319 : vector<1x32xf32> to vector<16x32xf32>
    %321 = arith.addf %317, %320 : vector<16x32xf32>
    %cst_148 = arith.constant 0.000000e+00 : f32
    %322 = vector.broadcast %cst_148 : f32 to vector<16x32xf32>
    %323 = arith.maximumf %321, %322 : vector<16x32xf32>
    %324 = arith.addf %323, %13 : vector<16x32xf32>
    %c3_i32 = arith.constant 3 : i32
    %325 = vector.broadcast %c3_i32 : i32 to vector<16x32xi32>
    %326 = arith.cmpi sge, %269, %325 : vector<16x32xi32>
    %c3_i32_149 = arith.constant 3 : i32
    %327 = tpu.dynamic_rotate %13 by %c3_i32_149 dim 0 : vector<16x32xf32>, i32 -> vector<16x32xf32>
    %cst_150 = arith.constant 0.000000e+00 : f32
    %328 = vector.broadcast %cst_150 : f32 to vector<16x32xf32>
    %329 = arith.select %326, %327, %328 : vector<16x32xi1>, vector<16x32xf32>
    %c5_i32 = arith.constant 5 : i32
    %330 = vector.broadcast %c5_i32 : i32 to vector<16x32xi32>
    %331 = arith.cmpi slt, %269, %330 : vector<16x32xi32>
    %c13_i32 = arith.constant 13 : i32
    %332 = tpu.dynamic_rotate %13 by %c13_i32 dim 0 : vector<16x32xf32>, i32 -> vector<16x32xf32>
    %cst_151 = arith.constant 0.000000e+00 : f32
    %333 = vector.broadcast %cst_151 : f32 to vector<16x32xf32>
    %334 = arith.select %331, %332, %333 : vector<16x32xi1>, vector<16x32xf32>
    %335 = arith.truncf %329 : vector<16x32xf32> to vector<16x32xbf16>
    %336 = arith.truncf %334 : vector<16x32xf32> to vector<16x32xbf16>
    %337 = tpu.concatenate %335, %270, %336 in 1 : vector<16x32xbf16>, vector<16x32xbf16>, vector<16x32xbf16> -> vector<16x96xbf16>
    %c2_152 = arith.constant 2 : index
    %c0_153 = arith.constant 0 : index
    %c0_154 = arith.constant 0 : index
    %338 = vector.load %arg9[%c2_152, %c0_153, %c0_154] : memref<3x96x32xbf16, #tpu.memory_space<vmem>>, vector<1x96x32xbf16>
    %339 = vector.shape_cast %338 : vector<1x96x32xbf16> to vector<96x32xbf16>
    %cst_155 = arith.constant dense<0.000000e+00> : vector<16x32xf32>
    %340 = tpu.matmul %337, %339, %cst_155 {dimension_numbers = #tpu.dot_dimension_numbers<[1], [0], [0], [1], [0, 0, 1, 1], [], []>} : vector<16x96xbf16>, vector<96x32xbf16>, vector<16x32xf32> -> vector<16x32xf32>
    %c2_156 = arith.constant 2 : index
    %c0_157 = arith.constant 0 : index
    %c0_158 = arith.constant 0 : index
    %341 = vector.load %arg10[%c2_156, %c0_157, %c0_158] : memref<3x1x32xf32, #tpu.memory_space<vmem>>, vector<1x1x32xf32>
    %342 = vector.shape_cast %341 : vector<1x1x32xf32> to vector<1x32xf32>
    %343 = vector.broadcast %342 : vector<1x32xf32> to vector<16x32xf32>
    %344 = arith.mulf %340, %343 : vector<16x32xf32>
    %c2_159 = arith.constant 2 : index
    %c0_160 = arith.constant 0 : index
    %c0_161 = arith.constant 0 : index
    %345 = vector.load %arg11[%c2_159, %c0_160, %c0_161] : memref<3x1x32xf32, #tpu.memory_space<vmem>>, vector<1x1x32xf32>
    %346 = vector.shape_cast %345 : vector<1x1x32xf32> to vector<1x32xf32>
    %347 = vector.broadcast %346 : vector<1x32xf32> to vector<16x32xf32>
    %348 = arith.addf %344, %347 : vector<16x32xf32>
    %cst_162 = arith.constant 0.000000e+00 : f32
    %349 = vector.broadcast %cst_162 : f32 to vector<16x32xf32>
    %350 = arith.maximumf %348, %349 : vector<16x32xf32>
    %351 = arith.addf %350, %13 : vector<16x32xf32>
    %352 = tpu.concatenate %267, %297, %324, %351 in 1 : vector<16x32xf32>, vector<16x32xf32>, vector<16x32xf32>, vector<16x32xf32> -> vector<16x128xf32>
    %353 = vector.shape_cast %352 : vector<16x128xf32> to vector<2x8x128xf32>
    %c0_163 = arith.constant 0 : index
    %c0_164 = arith.constant 0 : index
    %c0_165 = arith.constant 0 : index
    %354 = vector.load %arg12[%c0_163, %c0_164, %c0_165] : memref<2x8x128xf32, #tpu.memory_space<vmem>>, vector<2x8x128xf32>
    tpu.vector_store %arg12[%c0_163, %c0_164, %c0_165], %353 {strides = array<i32>} : memref<2x8x128xf32, #tpu.memory_space<vmem>>, vector<2x8x128xf32>,
    return
  }
  func.func @transform_0(%arg0: i32) -> (i32, i32, i32) {
    %c0_i32 = arith.constant 0 : i32
    %c0_i32_0 = arith.constant 0 : i32
    %c0_i32_1 = arith.constant 0 : i32
    return %arg0, %c0_i32, %c0_i32_0 : i32, i32, i32
  }
  func.func @transform_1(%arg0: i32) -> (i32, i32) {
    %c0_i32 = arith.constant 0 : i32
    %c0_i32_0 = arith.constant 0 : i32
    %c0_i32_1 = arith.constant 0 : i32
    return %c0_i32, %c0_i32_0 : i32, i32
  }
  func.func @transform_2(%arg0: i32) -> (i32, i32) {
    %c0_i32 = arith.constant 0 : i32
    %c0_i32_0 = arith.constant 0 : i32
    %c0_i32_1 = arith.constant 0 : i32
    return %c0_i32, %c0_i32_0 : i32, i32
  }
  func.func @transform_3(%arg0: i32) -> (i32, i32, i32, i32) {
    %c0_i32 = arith.constant 0 : i32
    %c0_i32_0 = arith.constant 0 : i32
    %c0_i32_1 = arith.constant 0 : i32
    %c0_i32_2 = arith.constant 0 : i32
    %c0_i32_3 = arith.constant 0 : i32
    return %c0_i32, %c0_i32_0, %c0_i32_1, %c0_i32_2 : i32, i32, i32, i32
  }
  func.func @transform_4(%arg0: i32) -> (i32, i32, i32, i32) {
    %c0_i32 = arith.constant 0 : i32
    %c0_i32_0 = arith.constant 0 : i32
    %c0_i32_1 = arith.constant 0 : i32
    %c0_i32_2 = arith.constant 0 : i32
    %c0_i32_3 = arith.constant 0 : i32
    return %c0_i32, %c0_i32_0, %c0_i32_1, %c0_i32_2 : i32, i32, i32, i32
  }
  func.func @transform_5(%arg0: i32) -> (i32, i32, i32) {
    %c0_i32 = arith.constant 0 : i32
    %c0_i32_0 = arith.constant 0 : i32
    %c0_i32_1 = arith.constant 0 : i32
    %c0_i32_2 = arith.constant 0 : i32
    return %c0_i32, %c0_i32_0, %c0_i32_1 : i32, i32, i32
  }
  func.func @transform_6(%arg0: i32) -> (i32, i32) {
    %c0_i32 = arith.constant 0 : i32
    %c0_i32_0 = arith.constant 0 : i32
    %c0_i32_1 = arith.constant 0 : i32
    return %c0_i32, %c0_i32_0 : i32, i32
  }
  func.func @transform_7(%arg0: i32) -> (i32, i32) {
    %c0_i32 = arith.constant 0 : i32
    %c0_i32_0 = arith.constant 0 : i32
    %c0_i32_1 = arith.constant 0 : i32
    return %c0_i32, %c0_i32_0 : i32, i32
  }
  func.func @transform_8(%arg0: i32) -> (i32, i32, i32) {
    %c0_i32 = arith.constant 0 : i32
    %c0_i32_0 = arith.constant 0 : i32
    %c0_i32_1 = arith.constant 0 : i32
    %c0_i32_2 = arith.constant 0 : i32
    return %c0_i32, %c0_i32_0, %c0_i32_1 : i32, i32, i32
  }
  func.func @transform_9(%arg0: i32) -> (i32, i32, i32) {
    %c0_i32 = arith.constant 0 : i32
    %c0_i32_0 = arith.constant 0 : i32
    %c0_i32_1 = arith.constant 0 : i32
    %c0_i32_2 = arith.constant 0 : i32
    return %c0_i32, %c0_i32_0, %c0_i32_1 : i32, i32, i32
  }
  func.func @transform_10(%arg0: i32) -> (i32, i32, i32) {
    %c0_i32 = arith.constant 0 : i32
    %c0_i32_0 = arith.constant 0 : i32
    %c0_i32_1 = arith.constant 0 : i32
    %c0_i32_2 = arith.constant 0 : i32
    return %c0_i32, %c0_i32_0, %c0_i32_1 : i32, i32, i32
  }
  func.func @transform_11(%arg0: i32) -> (i32, i32, i32) {
    %c0_i32 = arith.constant 0 : i32
    %c0_i32_0 = arith.constant 0 : i32
    %c0_i32_1 = arith.constant 0 : i32
    return %arg0, %c0_i32, %c0_i32_0 : i32, i32, i32
  }
}

</mosaic_0001>

<bundles_post_ra>
// kernel: temporal_consensus.1
= control target key start
LH: loop header
LB: loop body
LE: loop exit
PB: predicated region body
PF: predicated region fallthrough
CT: control target
= control target key end

     0   :  { %v3354_v1 = vmov 0.0   ;;  %vm53_vm0 = vcmask 130048   ;;  %vm3355_vm1 = vmmov 0   ;;  %s4024_s0 = inlined_call_operand.vmem [shape: f32[2,8,16], index: 0, kind: input, shape index: {}]   ;;  %s4025_s1 = inlined_call_operand.vmem [shape: bf16[16,64], index: 1, kind: input, shape index: {}]   ;;  %s4026_s2 = inlined_call_operand.vmem [shape: f32[16,32], index: 2, kind: input, shape index: {}]   ;;  %s4027_s3 = inlined_call_operand.vmem [shape: bf16[3,4,32,8], index: 3, kind: input, shape index: {}]   ;;  %s4028_s4 = inlined_call_operand.vmem [shape: f32[3,4,1,8], index: 4, kind: input, shape index: {}]   ;;  %s4029_s5 = inlined_call_operand.vmem [shape: bf16[4,8,32], index: 5, kind: input, shape index: {}]   ;;  %s4030_s6 = inlined_call_operand.vmem [shape: bf16[32,32], index: 6, kind: input, shape index: {}]   ;;  %s4031_s7 = inlined_call_operand.vmem [shape: bf16[32,32], index: 7, kind: input, shape index: {}]   ;;  %s4032_s8 = inlined_call_operand.vmem [shape: bf16[3,96,32], index: 8, kind: input, shape index: {}]   ;;  %s4033_s9 = inlined_call_operand.vmem [shape: f32[3,1,32], index: 9, kind: input, shape index: {}]   ;;  %s4034_s10 = inlined_call_operand.vmem [shape: f32[3,1,32], index: 10, kind: input, shape index: {}]   ;;  %s4035_s11 = inlined_call_operand.hbm [shape: f32[2,8,128], index: 11, kind: output, shape index: {}]  }
   0x1   :  { %v3242_v0 = vld [vmem:[%s4025_s1] sm:$0xff]   ;;  %2948 = vmatprep.subr.bf16.mxu0 %v3354_v1  ;;  %v43_v3 = vld [vmem:[%s4024_s0 + $0x8] sm:$0xff]  ;;  %2970 = vmatprep.subr.bf16.mxu1 %v3354_v1 }
   0x2   :  { %v42_v2 = vld [vmem:[%s4024_s0] sm:$0xff]  ;;  %2949 = vmatpush3.bf16.msra.mxu0 %v3242_v0  ;;  %2950 = vmatprep.mubr.msk.bf16.mxu0 %vm3355_vm1, %v3354_v1 }
   0x3   :  { %v44_v4 = vpack.c.bf16 %v43_v3, %v42_v2  ;;  %2954 = vmatprep.subr.bf16.mxu0 %v3354_v1  ;;  %2974 = vmatprep.mubr.msk.bf16.mxu1 %vm3355_vm1, %v3354_v1 }
   0x5   :  { %2951 = vmatmul.mubr.msk.bf16.vlgmr.msra.gmra.mrb[0].mxu0 %vm53_vm0, %v44_v4 }
   0x6   :  { %2958 = vmatprep.mubr.msk.bf16.mxu0 %vm3355_vm1, %v3354_v1 }
   0x7   :  { %16 = vsyncpa [#allocation3], 0  ;;  %v98_v5 = vlaneseq  ;;  %v40_v8 = vld [vmem:[%s4026_s2] sm:$0xff]  ;;  %vm114_vm2 = vcmask 261120   ;;  %v3245_v30 = vld [vmem:[%s4027_s3 + $0x8] sm:$0xff]   ;;  %vm365_vm3 = vcmask 64512  }
   0x8   :  { %v3243_v28 = vld [vmem:[%s4027_s3] sm:$0xff]   ;;  %v3246_v31 = vld [vmem:[%s4027_s3 + $0x88] sm:$0xff]   ;;  %vm489_vm4 = vcmask 1043456   ;;  %s3356_s20 = smov 32   ;;  %vm2220_vm10 = vcmask 523264   ;;  %vm2271_vm11 = vcmask 785408  }
   0x9   :  { %v3440_v6 = vshrl.u32 %v98_v5, 7  ;;  %v3244_v29 = vld [vmem:[%s4027_s3 + $0x80] sm:$0xff]   ;;  %2955 = vmatpush3.bf16.msra.mxu0 %v3243_v28  ;;  %v3248_v52 = vld [vmem:[%s4027_s3 + $0x48] sm:$0xff]  }
   0xa   :  { %2971 = vmatpush3.bf16.msra.mxu1 %v3244_v29  ;;  %2956 = vmatprep.subr.bf16.mxu0 %v3354_v1  ;;  %v3247_v50 = vld [vmem:[%s4027_s3 + $0x40] sm:$0xff]   ;;  %v2683_v2 = vld [vmem:[%s4028_s4 + $0x8] ss:$0 sm:$0xff] }
   0xb   :  { %v100_v7 = vsub.s32 0, %v3440_v6  ;;  %2972 = vmatprep.subr.bf16.mxu1 %v3354_v1  ;;  %v144_v38 = vsub.s32 2, %v3440_v6  ;;  %v150_v41 = vsub.s32 3, %v3440_v6  ;;  %v2675_v61 = vld [vmem:[%s4028_s4 + $0x4] ss:$0 sm:$0xff]  ;;  %vm2345_vm5 = vcmp.lt.s32.totalorder %v3440_v6, 6 }
   0xc   :  { %vm2205_vm6 = vcmp.lt.s32.totalorder %v3440_v6, 7  ;;  %vm2485_vm7 = vcmp.lt.s32.totalorder %v3440_v6, 5  ;;  %vm2200_vm8 = vcmp.lt.s32.totalorder %v3440_v6, 1  ;;  %vm2189_vm9 = vcmp.ge.s32.totalorder %v3440_v6, 1 }
   0xd   :  { %v101_v9 = vrot.slane %v40_v8, %v100_v7  ;;  %2957 = vmatpush3.bf16.msra.mxu0 %v3245_v30  ;;  %v145_v40 = vrot.slane %v40_v8, %v144_v38  ;;  %v151_v44 = vrot.slane %v40_v8, %v150_v41  ;;  %vm2340_vm12 = vcmp.lt.s32.totalorder %v3440_v6, 2 }
   0xe   :  { %2973 = vmatpush3.bf16.msra.mxu1 %v3246_v31  ;;  %2962 = vmatprep.subr.bf16.mxu0 %v3354_v1  ;;  %vm2480_vm13 = vcmp.lt.s32.totalorder %v3440_v6, 3  ;;  %vm2337_vm14 = vcmp.ge.s32.totalorder %v3440_v6, 2  ;;  %vm2477_vm15 = vcmp.ge.s32.totalorder %v3440_v6, 3 }
   0xf   :  { %2984 = vmatprep.subr.bf16.mxu1 %v3354_v1 }
  0xd8   :  { %v3448_v10 = vpop.f32.mrb[0].mxu0 }
  0xd9   :  { %v3451_v11 = vadd.f32 %v101_v9, %v3448_v10  ;;  %v2952_v12 = vpop.f32.mrb[1].mxu0 }
  0xda   :  { %v3453_v13 = vpop.f32.mrb[2].mxu0 }
  0xdb   :  { %v3456_v14 = vadd.f32 %v101_v9, %v3453_v13  ;;  %v2953_v15 = vpop.f32.mrb[3].mxu0  ;;  %v115_v16 = vsel %vm114_vm2, %v3451_v11, 0.0  ;;  %v2667_v9 = vld [vmem:[%s4028_s4] ss:$0 sm:$0xff] }
  0xdc   :  { %116 = vadd.xlane.f32.xlu0 %v115_v16 }
  0xdd   :  { %v118_v17 = vsel %vm114_vm2, %v3456_v14, 0.0 }
  0xe0   :  { %119 = vadd.xlane.f32.xlu0 %v118_v17 }
 0x169   :  { %v117_v18 = vpop.xlane.xlu0 %116 }
 0x16a   :  { %v122_v19 = vmul.f32 0.03125, %v117_v18 }
 0x16c   :  { %v124_v20 = vsub.f32 %v3451_v11, %v122_v19 }
 0x16d   :  { %v120_v21 = vpop.xlane.xlu0 %119 }
 0x16e   :  { %v123_v22 = vmul.f32 0.03125, %v120_v21  ;;  %v126_v23 = vmul.f32 %v124_v20, %v124_v20 }
 0x170   :  { %v125_v24 = vsub.f32 %v3456_v14, %v123_v22  ;;  %v128_v25 = vsel %vm114_vm2, %v126_v23, 0.0 }
 0x171   :  { %129 = vadd.xlane.f32.xlu1 %v128_v25 }
 0x172   :  { %v127_v26 = vmul.f32 %v125_v24, %v125_v24 }
 0x174   :  { %v131_v27 = vsel %vm114_vm2, %v127_v26, 0.0 }
 0x175   :  { %132 = vadd.xlane.f32.xlu1 %v131_v27 }
 0x1fe   :  { %v130_v32 = vpop.xlane.xlu1 %129 }
 0x1ff   :  { %v134_v33 = vmul.f32 0.03125, %v130_v32 }
 0x201   :  { %v136_v34 = vadd.f32 1e-05, %v134_v33 }
 0x202   :  { %v133_v35 = vpop.xlane.xlu1 %132 }
 0x203   :  { %3289 = vrsqrt.f32 %v136_v34  ;;  %v135_v36 = vmul.f32 0.03125, %v133_v35 }
 0x205   :  { %v137_v37 = vadd.f32 1e-05, %v135_v36 }
 0x207   :  { %3291 = vrsqrt.f32 %v137_v37 }
 0x20d   :  { %v3290_v39 = vpop.eup %3289 }
 0x20e   :  { %v140_v42 = vmul.f32 %v3290_v39, %v124_v20 }
 0x210   :  { %v146_v45 = vmul.f32 %v145_v40, %v140_v42 }
 0x211   :  { %v3292_v43 = vpop.eup %3291 }
 0x212   :  { %v141_v46 = vmul.f32 %v3292_v43, %v125_v24  ;;  %v152_v48 = vadd.f32 %v151_v44, %v146_v45 }
 0x214   :  { %v147_v47 = vmul.f32 %v145_v40, %v141_v46 }
 0x216   :  { %v153_v49 = vadd.f32 %v151_v44, %v147_v47 }
 0x218   :  { %v3487_v51 = vpack.c.bf16 %v153_v49, %v152_v48 }
 0x21a   :  { %2959 = vmatmul.mubr.msk.bf16.vlgmr.msra.gmra.mrb[4].mxu0 %vm114_vm2, %v3487_v51  ;;  %2975 = vmatmul.mubr.msk.bf16.vlgmr.msra.gmra.mrb[0].mxu1 %vm114_vm2, %v3487_v51 }
 0x21b   :  { %2963 = vmatpush3.bf16.msra.mxu0 %v3247_v50  ;;  %2966 = vmatprep.mubr.msk.bf16.mxu0 %vm3355_vm1, %v3354_v1 }
 0x21c   :  { %2964 = vmatprep.subr.bf16.mxu0 %v3354_v1  ;;  %2986 = vmatprep.mubr.msk.bf16.mxu1 %vm3355_vm1, %v3354_v1 }
 0x21f   :  { %2965 = vmatpush3.bf16.msra.mxu0 %v3248_v52 }
 0x220   :  { %2978 = vmatprep.subr.bf16.mxu0 %v3354_v1 }
 0x222   :  { %2967 = vmatmul.mubr.msk.bf16.vlgmr.msra.gmra.mrb[8].mxu0 %vm114_vm2, %v3487_v51 }
 0x223   :  { %2980 = vmatprep.mubr.msk.bf16.mxu0 %vm3355_vm1, %v3354_v1 }
 0x2ed   :  { %v226_v53 = vpop.f32.mrb[4].mxu0  ;;  %v354_v54 = vpop.f32.mrb[0].mxu1 }
 0x2ee   :  { %v2960_v55 = vpop.f32.mrb[5].mxu0  ;;  %v2976_v56 = vpop.f32.mrb[1].mxu1  ;;  %v355_v12 = vadd.f32 %v2683_v2, %v354_v54  ;;  %v227_v17 = vadd.f32 %v2667_v9, %v226_v53 }
 0x2ef   :  { %v229_v57 = vpop.f32.mrb[6].mxu0  ;;  %v357_v58 = vpop.f32.mrb[2].mxu1  ;;  %v3249_v55 = vld [vmem:[%s4027_s3 + $0x10] sm:$0xff]  }
 0x2f0   :  { %v2961_v59 = vpop.f32.mrb[7].mxu0  ;;  %v2977_v60 = vpop.f32.mrb[3].mxu1  ;;  %v358_v18 = vadd.f32 %v2683_v2, %v357_v58  ;;  %v484_v20 = vpack.c.bf16 %v355_v12, %v355_v12  ;;  %v230_v21 = vadd.f32 %v2667_v9, %v229_v57  ;;  %v361_v22 = vpack.c.bf16 %v227_v17, %v227_v17  ;;  %v3250_v58 = vld [vmem:[%s4027_s3 + $0x50] sm:$0xff]   ;;  %v2703_v17 = vld [vmem:[%s4028_s4 + $0x5] ss:$0 sm:$0xff] }
 0x2f1   :  { %v3251_v60 = vld [vmem:[%s4027_s3 + $0x18] sm:$0xff]  }
 0x2f2   :  { %v485_v23 = vpack.c.bf16 %v358_v18, %v358_v18  ;;  %v491_v24 = vsel %vm489_vm4, %v484_v20, 0  ;;  %v362_v25 = vpack.c.bf16 %v230_v21, %v230_v21 }
 0x2f4   :  { %v537_v26 = vsel %vm489_vm4, %v485_v23, 0 }
 0x2f5   :  { %v290_v62 = vpop.f32.mrb[8].mxu0 }
 0x2f6   :  { %v291_v63 = vadd.f32 %v2675_v61, %v290_v62  ;;  %v2968_v0 = vpop.f32.mrb[9].mxu0  ;;  %v3253_v62 = vld [vmem:[%s4027_s3 + $0x90] sm:$0xff]  }
 0x2f7   :  { %v293_v3 = vpop.f32.mrb[10].mxu0 }
 0x2f8   :  { %v363_v4 = vpack.c.bf16 %v291_v63, %v291_v63  ;;  %v294_v5 = vadd.f32 %v2675_v61, %v293_v3  ;;  %v2969_v8 = vpop.f32.mrb[11].mxu0  ;;  %v3252_v61 = vld [vmem:[%s4027_s3 + $0x58] sm:$0xff]  }
 0x2f9   :  { %v3254_v63 = vld [vmem:[%s4027_s3 + $0x98] sm:$0xff]  }
 0x2fa   :  { %v370_v15 = vsel %vm365_vm3, %v363_v4, 0  ;;  %v364_v16 = vpack.c.bf16 %v294_v5, %v294_v5 }
 0x2fb   :  { %2979 = vmatpush3.bf16.xpose.msra.mxu0 %v370_v15 }
 0x2fc   :  { %v416_v19 = vsel %vm365_vm3, %v364_v16, 0  ;;  %2990 = vmatprep.subr.bf16.mxu0 %v3354_v1 }
 0x2fd   :  { %2985 = vmatpush3.bf16.xpose.msra.mxu1 %v416_v19 }
 0x2fe   :  { %2996 = vmatprep.subr.bf16.mxu1 %v3354_v1 }
 0x302   :  { %2981 = vmatmul.mubr.msk.bf16.vlgmr.msra.gmra.mrb[12].mxu0 %vm365_vm3, %v361_v22 }
 0x303   :  { %2991 = vmatpush3.bf16.msra.mxu0 %v491_v24  ;;  %2992 = vmatprep.mubr.msk.bf16.mxu0 %vm3355_vm1, %v3354_v1 }
 0x304   :  { %2987 = vmatmul.mubr.msk.bf16.vlgmr.msra.gmra.mrb[4].mxu1 %vm365_vm3, %v362_v25  ;;  %3002 = vmatprep.subr.bf16.mxu0 %v3354_v1 }
 0x305   :  { %2997 = vmatpush3.bf16.msra.mxu1 %v537_v26  ;;  %2998 = vmatprep.mubr.msk.bf16.mxu1 %vm3355_vm1, %v3354_v1 }
 0x306   :  { %3010 = vmatprep.subr.bf16.mxu1 %v3354_v1 }
 0x3d5   :  { %v406_v27 = vpop.f32.mrb[12].mxu0 }
 0x3d6   :  { %v458_v28 = vmul.f32 0.35355338, %v406_v27  ;;  %v2982_v29 = vpop.f32.mrb[13].mxu0 }
 0x3d7   :  { %v409_v30 = vpop.f32.mrb[14].mxu0  ;;  %v452_v31 = vpop.f32.mrb[4].mxu1  ;;  %v2711_v29 = vld [vmem:[%s4028_s4 + $0x9] ss:$0 sm:$0xff] }
 0x3d8   :  { %v459_v32 = vmul.f32 0.35355338, %v452_v31  ;;  %v2983_v33 = vpop.f32.mrb[15].mxu0  ;;  %v2988_v34 = vpop.f32.mrb[5].mxu1  ;;  %v460_v35 = vsel %vm365_vm3, %v458_v28, -inf }
 0x3d9   :  { %v455_v36 = vpop.f32.mrb[6].mxu1  ;;  %461 = vmax.xlane.f32.xlu1 %v460_v35 }
 0x3da   :  { %v2989_v37 = vpop.f32.mrb[7].mxu1  ;;  %v463_v38 = vsel %vm365_vm3, %v459_v32, -inf }
 0x3db   :  { %464 = vmax.xlane.f32.xlu0 %v463_v38 }
 0x466   :  { %v462_v39 = vpop.xlane.xlu1 %461 }
 0x467   :  { %v466_v40 = vsub.f32 %v458_v28, %v462_v39  ;;  %v2695_v28 = vld [vmem:[%s4028_s4 + $0x1] ss:$0 sm:$0xff] }
 0x468   :  { %v465_v41 = vpop.xlane.xlu0 %464 }
 0x469   :  { %v468_v42 = vmul.f32 1.442695, %v466_v40  ;;  %v467_v43 = vsub.f32 %v459_v32, %v465_v41 }
 0x46b   :  { %3293 = vpow2.f32 %v468_v42  ;;  %v470_v44 = vmul.f32 1.442695, %v467_v43 }
 0x46d   :  { %3295 = vpow2.f32 %v470_v44 }
 0x475   :  { %v3294_v45 = vpop.eup %3293 }
 0x476   :  { %v472_v46 = vsel %vm365_vm3, %v3294_v45, 0.0 }
 0x477   :  { %v3296_v47 = vpop.eup %3295  ;;  %473 = vadd.xlane.f32.xlu1 %v472_v46 }
 0x478   :  { %v475_v48 = vsel %vm365_vm3, %v3296_v47, 0.0 }
 0x479   :  { %476 = vadd.xlane.f32.xlu0 %v475_v48 }
 0x504   :  { %v474_v49 = vpop.xlane.xlu1 %473 }
 0x505   :  { %3297 = vrcp.f32 %v474_v49 }
 0x506   :  { %v477_v50 = vpop.xlane.xlu0 %476 }
 0x507   :  { %3299 = vrcp.f32 %v477_v50 }
 0x50f   :  { %v3298_v52 = vpop.eup %3297 }
 0x510   :  { %v479_v53 = vmul.f32 %v3298_v52, %v3294_v45 }
 0x511   :  { %v3300_v54 = vpop.eup %3299 }
 0x512   :  { %v481_v56 = vmul.f32 %v3300_v54, %v3296_v47  ;;  %v482_v57 = vpack.c.bf16 %v479_v53, %v479_v53 }
 0x514   :  { %2993 = vmatmul.mubr.msk.bf16.vlgmr.msra.gmra.mrb[16].mxu0 %vm365_vm3, %v482_v57  ;;  %v483_v59 = vpack.c.bf16 %v481_v56, %v481_v56 }
 0x515   :  { %3003 = vmatpush3.bf16.msra.mxu0 %v3249_v55  ;;  %3006 = vmatprep.mubr.msk.bf16.mxu0 %vm3355_vm1, %v3354_v1 }
 0x516   :  { %2999 = vmatmul.mubr.msk.bf16.vlgmr.msra.gmra.mrb[8].mxu1 %vm365_vm3, %v483_v59  ;;  %3004 = vmatprep.subr.bf16.mxu0 %v3354_v1 }
 0x517   :  { %3011 = vmatpush3.bf16.msra.mxu1 %v3250_v58  ;;  %3014 = vmatprep.mubr.msk.bf16.mxu1 %vm3355_vm1, %v3354_v1 }
 0x518   :  { %3012 = vmatprep.subr.bf16.mxu1 %v3354_v1 }
 0x519   :  { %3005 = vmatpush3.bf16.msra.mxu0 %v3251_v60 }
 0x51a   :  { %3018 = vmatprep.subr.bf16.mxu0 %v3354_v1 }
 0x51b   :  { %3013 = vmatpush3.bf16.msra.mxu1 %v3252_v61 }
 0x51c   :  { %3007 = vmatmul.mubr.msk.bf16.vlgmr.msra.gmra.mrb[20].mxu0 %vm114_vm2, %v3487_v51  ;;  %3026 = vmatprep.subr.bf16.mxu1 %v3354_v1 }
 0x51d   :  { %3019 = vmatpush3.bf16.msra.mxu0 %v3253_v62  ;;  %3022 = vmatprep.mubr.msk.bf16.mxu0 %vm3355_vm1, %v3354_v1 }
 0x51e   :  { %3015 = vmatmul.mubr.msk.bf16.vlgmr.msra.gmra.mrb[12].mxu1 %vm114_vm2, %v3487_v51  ;;  %3020 = vmatprep.subr.bf16.mxu0 %v3354_v1 }
 0x51f   :  { %3028 = vmatprep.mubr.msk.bf16.mxu1 %vm3355_vm1, %v3354_v1 }
 0x521   :  { %3021 = vmatpush3.bf16.msra.mxu0 %v3254_v63 }
 0x522   :  { %3032 = vmatprep.subr.bf16.mxu0 %v3354_v1 }
 0x524   :  { %3023 = vmatmul.mubr.msk.bf16.vlgmr.msra.gmra.mrb[24].mxu0 %vm114_vm2, %v3487_v51 }
 0x525   :  { %3034 = vmatprep.mubr.msk.bf16.mxu0 %vm3355_vm1, %v3354_v1 }
 0x5e7   :  { %v3575_v0 = vpop.f32.mrb[16].mxu0 }
 0x5e8   :  { %v2994_v2 = vpop.f32.mrb[17].mxu0 }
 0x5e9   :  { %v530_v3 = vpop.f32.mrb[18].mxu0  ;;  %v3577_v4 = vpop.f32.mrb[8].mxu1 }
 0x5ea   :  { %v579_v5 = vpack.c.bf16 %v3577_v4, %v3575_v0  ;;  %v2995_v8 = vpop.f32.mrb[19].mxu0  ;;  %v3000_v9 = vpop.f32.mrb[9].mxu1 }
 0x5eb   :  { %v576_v12 = vpop.f32.mrb[10].mxu1 }
 0x5ec   :  { %v3001_v15 = vpop.f32.mrb[11].mxu1 }
 0x5ef   :  { %v638_v16 = vpop.f32.mrb[20].mxu0 }
 0x5f0   :  { %v3008_v18 = vpop.f32.mrb[21].mxu0  ;;  %v639_v33 = vadd.f32 %v2695_v28, %v638_v16 }
 0x5f1   :  { %v641_v19 = vpop.f32.mrb[22].mxu0  ;;  %v702_v20 = vpop.f32.mrb[12].mxu1 }
 0x5f2   :  { %v703_v21 = vadd.f32 %v2703_v17, %v702_v20  ;;  %v3009_v22 = vpop.f32.mrb[23].mxu0  ;;  %v3016_v23 = vpop.f32.mrb[13].mxu1  ;;  %v642_v38 = vadd.f32 %v2695_v28, %v641_v19  ;;  %v773_v42 = vpack.c.bf16 %v639_v33, %v639_v33  ;;  %v2719_v19 = vld [vmem:[%s4029_s5 + $0x4] sm:$0xf] }
 0x5f3   :  { %v705_v24 = vpop.f32.mrb[14].mxu1  ;;  %v580_v22 = vld [vmem:[%s4029_s5] sm:$0xf] }
 0x5f4   :  { %v775_v25 = vpack.c.bf16 %v703_v21, %v703_v21  ;;  %v706_v26 = vadd.f32 %v2703_v17, %v705_v24  ;;  %v3017_v27 = vpop.f32.mrb[15].mxu1  ;;  %v774_v44 = vpack.c.bf16 %v642_v38, %v642_v38  ;;  %v3255_v28 = vld [vmem:[%s4027_s3 + $0x60] sm:$0xff]  }
 0x5f5   :  { %v1043_v27 = vsel %vm489_vm4, %v580_v22, 0 }
 0x5f6   :  { %v781_v30 = vsel %vm365_vm3, %v775_v25, 0  ;;  %v776_v31 = vpack.c.bf16 %v706_v26, %v706_v26  ;;  %v996_v25 = vsel %vm489_vm4, %v2719_v19, 0 }
 0x5f7   :  { %v766_v32 = vpop.f32.mrb[24].mxu0  ;;  %3027 = vmatpush3.bf16.xpose.msra.mxu1 %v781_v30 }
 0x5f8   :  { %v827_v34 = vsel %vm365_vm3, %v776_v31, 0  ;;  %v767_v35 = vadd.f32 %v2711_v29, %v766_v32  ;;  %v3024_v36 = vpop.f32.mrb[25].mxu0  ;;  %3038 = vmatprep.subr.bf16.mxu1 %v3354_v1  ;;  %v3257_v31 = vld [vmem:[%s4027_s3 + $0x20] sm:$0xff]  }
 0x5f9   :  { %v769_v37 = vpop.f32.mrb[26].mxu0  ;;  %3033 = vmatpush3.bf16.xpose.msra.mxu0 %v827_v34 }
 0x5fa   :  { %v895_v39 = vpack.c.bf16 %v767_v35, %v767_v35  ;;  %v770_v40 = vadd.f32 %v2711_v29, %v769_v37  ;;  %v3025_v41 = vpop.f32.mrb[27].mxu0  ;;  %3044 = vmatprep.subr.bf16.mxu0 %v3354_v1  ;;  %v3256_v29 = vld [vmem:[%s4027_s3 + $0x68] sm:$0xff]  }
 0x5fb   :  { %v3258_v37 = vld [vmem:[%s4027_s3 + $0x28] sm:$0xff]  }
 0x5fc   :  { %v896_v43 = vpack.c.bf16 %v770_v40, %v770_v40  ;;  %v901_v45 = vsel %vm489_vm4, %v895_v39, 0  ;;  %v3259_v39 = vld [vmem:[%s4027_s3 + $0xa0] sm:$0xff]  }
 0x5fe   :  { %3029 = vmatmul.mubr.msk.bf16.vlgmr.msra.gmra.mrb[16].mxu1 %vm365_vm3, %v773_v42  ;;  %v947_v46 = vsel %vm489_vm4, %v896_v43, 0  ;;  %v3260_v43 = vld [vmem:[%s4027_s3 + $0xa8] sm:$0xff]  }
 0x5ff   :  { %3039 = vmatpush3.bf16.msra.mxu1 %v901_v45  ;;  %3040 = vmatprep.mubr.msk.bf16.mxu1 %vm3355_vm1, %v3354_v1 }
 0x600   :  { %3035 = vmatmul.mubr.msk.bf16.vlgmr.msra.gmra.mrb[28].mxu0 %vm365_vm3, %v774_v44  ;;  %3050 = vmatprep.subr.bf16.mxu1 %v3354_v1  ;;  %v2734_v44 = vld [vmem:[%s4028_s4 + $0x6] ss:$0 sm:$0xff] }
 0x601   :  { %3045 = vmatpush3.bf16.msra.mxu0 %v947_v46  ;;  %3046 = vmatprep.mubr.msk.bf16.mxu0 %vm3355_vm1, %v3354_v1 }
 0x602   :  { %3056 = vmatprep.subr.bf16.mxu0 %v3354_v1 }
 0x6d1   :  { %v817_v47 = vpop.f32.mrb[16].mxu1 }
 0x6d2   :  { %v869_v48 = vmul.f32 0.35355338, %v817_v47  ;;  %v3030_v49 = vpop.f32.mrb[17].mxu1 }
 0x6d3   :  { %v820_v50 = vpop.f32.mrb[18].mxu1  ;;  %v863_v52 = vpop.f32.mrb[28].mxu0 }
 0x6d4   :  { %v870_v53 = vmul.f32 0.35355338, %v863_v52  ;;  %v3031_v54 = vpop.f32.mrb[19].mxu1  ;;  %v3036_v55 = vpop.f32.mrb[29].mxu0  ;;  %v871_v56 = vsel %vm365_vm3, %v869_v48, -inf }
 0x6d5   :  { %872 = vmax.xlane.f32.xlu0 %v871_v56  ;;  %v866_v57 = vpop.f32.mrb[30].mxu0 }
 0x6d6   :  { %v3037_v58 = vpop.f32.mrb[31].mxu0  ;;  %v874_v59 = vsel %vm365_vm3, %v870_v53, -inf }
 0x6d7   :  { %875 = vmax.xlane.f32.xlu1 %v874_v59 }
 0x762   :  { %v873_v60 = vpop.xlane.xlu0 %872 }
 0x763   :  { %v877_v61 = vsub.f32 %v869_v48, %v873_v60 }
 0x764   :  { %v876_v62 = vpop.xlane.xlu1 %875 }
 0x765   :  { %v879_v63 = vmul.f32 1.442695, %v877_v61  ;;  %v878_v2 = vsub.f32 %v870_v53, %v876_v62  ;;  %v2726_v62 = vld [vmem:[%s4028_s4 + $0x2] ss:$0 sm:$0xff] }
 0x767   :  { %3301 = vpow2.f32 %v879_v63  ;;  %v881_v3 = vmul.f32 1.442695, %v878_v2 }
 0x769   :  { %3303 = vpow2.f32 %v881_v3 }
 0x771   :  { %v3302_v8 = vpop.eup %3301 }
 0x772   :  { %v883_v9 = vsel %vm365_vm3, %v3302_v8, 0.0 }
 0x773   :  { %v3304_v12 = vpop.eup %3303  ;;  %884 = vadd.xlane.f32.xlu0 %v883_v9 }
 0x774   :  { %v886_v15 = vsel %vm365_vm3, %v3304_v12, 0.0 }
 0x775   :  { %887 = vadd.xlane.f32.xlu1 %v886_v15 }
 0x800   :  { %v885_v16 = vpop.xlane.xlu0 %884 }
 0x801   :  { %3305 = vrcp.f32 %v885_v16 }
 0x802   :  { %v888_v17 = vpop.xlane.xlu1 %887 }
 0x803   :  { %3307 = vrcp.f32 %v888_v17  ;;  %v2742_v17 = vld [vmem:[%s4028_s4 + $0xa] ss:$0 sm:$0xff] }
 0x80b   :  { %v3306_v18 = vpop.eup %3305 }
 0x80c   :  { %v890_v20 = vmul.f32 %v3306_v18, %v3302_v8 }
 0x80d   :  { %v3308_v21 = vpop.eup %3307 }
 0x80e   :  { %v892_v23 = vmul.f32 %v3308_v21, %v3304_v12  ;;  %v893_v24 = vpack.c.bf16 %v890_v20, %v890_v20 }
 0x810   :  { %3041 = vmatmul.mubr.msk.bf16.vlgmr.msra.gmra.mrb[20].mxu1 %vm365_vm3, %v893_v24  ;;  %v894_v26 = vpack.c.bf16 %v892_v23, %v892_v23 }
 0x811   :  { %3051 = vmatpush3.bf16.msra.mxu1 %v996_v25  ;;  %3052 = vmatprep.mubr.msk.bf16.mxu1 %vm3355_vm1, %v3354_v1 }
 0x812   :  { %3047 = vmatmul.mubr.msk.bf16.vlgmr.msra.gmra.mrb[32].mxu0 %vm365_vm3, %v894_v26  ;;  %3062 = vmatprep.subr.bf16.mxu1 %v3354_v1 }
 0x813   :  { %3057 = vmatpush3.bf16.msra.mxu0 %v1043_v27  ;;  %3058 = vmatprep.mubr.msk.bf16.mxu0 %vm3355_vm1, %v3354_v1 }
 0x814   :  { %3070 = vmatprep.subr.bf16.mxu0 %v3354_v1 }
 0x81a   :  { %3059 = vmatmul.mubr.msk.bf16.vlgmr.msra.gmra.mrb[36].mxu0 %vm365_vm3, %v579_v5 }
 0x81b   :  { %3071 = vmatpush3.bf16.msra.mxu0 %v3255_v28  ;;  %3074 = vmatprep.mubr.msk.bf16.mxu0 %vm3355_vm1, %v3354_v1 }
 0x81c   :  { %3072 = vmatprep.subr.bf16.mxu0 %v3354_v1 }
 0x81f   :  { %3073 = vmatpush3.bf16.msra.mxu0 %v3256_v29 }
 0x820   :  { %3086 = vmatprep.subr.bf16.mxu0 %v3354_v1 }
 0x822   :  { %3075 = vmatmul.mubr.msk.bf16.vlgmr.msra.gmra.mrb[40].mxu0 %vm114_vm2, %v3487_v51 }
 0x823   :  { %3088 = vmatprep.mubr.msk.bf16.mxu0 %vm3355_vm1, %v3354_v1 }
 0x8e3   :  { %v937_v0 = vpop.f32.mrb[20].mxu1 }
 0x8e4   :  { %v3042_v4 = vpop.f32.mrb[21].mxu1 }
 0x8e5   :  { %v940_v5 = vpop.f32.mrb[22].mxu1  ;;  %v983_v30 = vpop.f32.mrb[32].mxu0 }
 0x8e6   :  { %v989_v32 = vpack.c.bf16 %v983_v30, %v937_v0  ;;  %v3043_v33 = vpop.f32.mrb[23].mxu1  ;;  %v3048_v34 = vpop.f32.mrb[33].mxu0 }
 0x8e7   :  { %v986_v35 = vpop.f32.mrb[34].mxu0 }
 0x8e8   :  { %v3049_v36 = vpop.f32.mrb[35].mxu0  ;;  %3053 = vmatmul.mubr.msk.bf16.vlgmr.msra.gmra.mrb[24].mxu1 %vm365_vm3, %v989_v32 }
 0x8e9   :  { %3063 = vmatpush3.bf16.msra.mxu1 %v3257_v31  ;;  %3066 = vmatprep.mubr.msk.bf16.mxu1 %vm3355_vm1, %v3354_v1 }
 0x8ea   :  { %3064 = vmatprep.subr.bf16.mxu1 %v3354_v1 }
 0x8ed   :  { %3065 = vmatpush3.bf16.msra.mxu1 %v3258_v37  ;;  %v1079_v38 = vpop.f32.mrb[36].mxu0 }
 0x8ee   :  { %v3060_v40 = vpop.f32.mrb[37].mxu0  ;;  %3078 = vmatprep.subr.bf16.mxu1 %v3354_v1 }
 0x8ef   :  { %v1082_v41 = vpop.f32.mrb[38].mxu0 }
 0x8f0   :  { %v3061_v42 = vpop.f32.mrb[39].mxu0  ;;  %3067 = vmatmul.mubr.msk.bf16.vlgmr.msra.gmra.mrb[28].mxu1 %vm114_vm2, %v3487_v51 }
 0x8f1   :  { %3079 = vmatpush3.bf16.msra.mxu1 %v3259_v39  ;;  %3082 = vmatprep.mubr.msk.bf16.mxu1 %vm3355_vm1, %v3354_v1 }
 0x8f2   :  { %3080 = vmatprep.subr.bf16.mxu1 %v3354_v1 }
 0x8f5   :  { %3081 = vmatpush3.bf16.msra.mxu1 %v3260_v43  ;;  %v1207_v45 = vpop.f32.mrb[40].mxu0 }
 0x8f6   :  { %v1208_v46 = vadd.f32 %v2734_v44, %v1207_v45  ;;  %v3076_v47 = vpop.f32.mrb[41].mxu0  ;;  %3092 = vmatprep.subr.bf16.mxu1 %v3354_v1 }
 0x8f7   :  { %v1210_v48 = vpop.f32.mrb[42].mxu0 }
 0x8f8   :  { %v1280_v49 = vpack.c.bf16 %v1208_v46, %v1208_v46  ;;  %v1211_v50 = vadd.f32 %v2734_v44, %v1210_v48  ;;  %v3077_v52 = vpop.f32.mrb[43].mxu0  ;;  %3083 = vmatmul.mubr.msk.bf16.vlgmr.msra.gmra.mrb[32].mxu1 %vm114_vm2, %v3487_v51 }
 0x8f9   :  { %3094 = vmatprep.mubr.msk.bf16.mxu1 %vm3355_vm1, %v3354_v1 }
 0x8fa   :  { %v1286_v53 = vsel %vm365_vm3, %v1280_v49, 0  ;;  %v1281_v54 = vpack.c.bf16 %v1211_v50, %v1211_v50  ;;  %v2750_v50 = vld [vmem:[%s4029_s5 + $0x8] sm:$0xf] }
 0x8fb   :  { %3087 = vmatpush3.bf16.xpose.msra.mxu0 %v1286_v53 }
 0x8fc   :  { %v1332_v55 = vsel %vm365_vm3, %v1281_v54, 0  ;;  %3098 = vmatprep.subr.bf16.mxu0 %v3354_v1 }
 0x8fe   :  { %3093 = vmatpush3.bf16.xpose.msra.mxu1 %v1332_v55 }
 0x8ff   :  { %3104 = vmatprep.subr.bf16.mxu1 %v3354_v1 }
 0x9bb   :  { %v1032_v56 = vpop.f32.mrb[24].mxu1 }
 0x9bc   :  { %v3676_v57 = vadd.f32 %v1079_v38, %v1032_v56  ;;  %v3054_v58 = vpop.f32.mrb[25].mxu1  ;;  %v1501_v56 = vsel %vm489_vm4, %v2750_v50, 0 }
 0x9bd   :  { %v1035_v59 = vpop.f32.mrb[26].mxu1  ;;  %v3261_v58 = vld [vmem:[%s4027_s3 + $0x30] sm:$0xff]  }
 0x9be   :  { %v3678_v60 = vadd.f32 %v1082_v41, %v1035_v59  ;;  %v3055_v61 = vpop.f32.mrb[27].mxu1 }
 0x9bf   :  { %v3262_v61 = vld [vmem:[%s4027_s3 + $0x38] sm:$0xff]  }
 0x9c3   :  { %v1143_v63 = vpop.f32.mrb[28].mxu1 }
 0x9c4   :  { %v1144_v2 = vadd.f32 %v2726_v62, %v1143_v63  ;;  %v3068_v3 = vpop.f32.mrb[29].mxu1  ;;  %v3264_v63 = vld [vmem:[%s4027_s3 + $0xb8] sm:$0xff]  }
 0x9c5   :  { %v1146_v8 = vpop.f32.mrb[30].mxu1 }
 0x9c6   :  { %v1278_v9 = vpack.c.bf16 %v1144_v2, %v1144_v2  ;;  %v1147_v12 = vadd.f32 %v2726_v62, %v1146_v8  ;;  %v3069_v15 = vpop.f32.mrb[31].mxu1  ;;  %v3263_v62 = vld [vmem:[%s4027_s3 + $0xb0] sm:$0xff]  }
 0x9c8   :  { %v1279_v16 = vpack.c.bf16 %v1147_v12, %v1147_v12  ;;  %3089 = vmatmul.mubr.msk.bf16.vlgmr.msra.gmra.mrb[44].mxu0 %vm365_vm3, %v1278_v9  ;;  %v3265_v12 = vld [vmem:[%s4027_s3 + $0x70] sm:$0xff]  }
 0x9c9   :  { %3100 = vmatprep.mubr.msk.bf16.mxu0 %vm3355_vm1, %v3354_v1 }
 0x9ca   :  { %3095 = vmatmul.mubr.msk.bf16.vlgmr.msra.gmra.mrb[36].mxu1 %vm365_vm3, %v1279_v16 }
 0x9cb   :  { %v1271_v18 = vpop.f32.mrb[32].mxu1  ;;  %3106 = vmatprep.mubr.msk.bf16.mxu1 %vm3355_vm1, %v3354_v1 }
 0x9cc   :  { %v1272_v19 = vadd.f32 %v2742_v17, %v1271_v18  ;;  %v3084_v20 = vpop.f32.mrb[33].mxu1 }
 0x9cd   :  { %v1274_v21 = vpop.f32.mrb[34].mxu1  ;;  %v3266_v20 = vld [vmem:[%s4027_s3 + $0x78] sm:$0xff]  }
 0x9ce   :  { %v1400_v22 = vpack.c.bf16 %v1272_v19, %v1272_v19  ;;  %v1275_v23 = vadd.f32 %v2742_v17, %v1274_v21  ;;  %v3085_v24 = vpop.f32.mrb[35].mxu1 }
 0x9d0   :  { %v1406_v25 = vsel %vm489_vm4, %v1400_v22, 0  ;;  %v1401_v26 = vpack.c.bf16 %v1275_v23, %v1275_v23 }
 0x9d1   :  { %3099 = vmatpush3.bf16.msra.mxu0 %v1406_v25 }
 0x9d2   :  { %v1452_v27 = vsel %vm489_vm4, %v1401_v26, 0  ;;  %3110 = vmatprep.subr.bf16.mxu0 %v3354_v1 }
 0x9d3   :  { %3105 = vmatpush3.bf16.msra.mxu1 %v1452_v27 }
 0x9d4   :  { %3116 = vmatprep.subr.bf16.mxu1 %v3354_v1 }
 0xa9b   :  { %v1322_v28 = vpop.f32.mrb[44].mxu0 }
 0xa9c   :  { %v1374_v29 = vmul.f32 0.35355338, %v1322_v28  ;;  %v3090_v0 = vpop.f32.mrb[45].mxu0 }
 0xa9d   :  { %v1325_v4 = vpop.f32.mrb[46].mxu0  ;;  %v1368_v5 = vpop.f32.mrb[36].mxu1 }
 0xa9e   :  { %v1375_v30 = vmul.f32 0.35355338, %v1368_v5  ;;  %v3091_v31 = vpop.f32.mrb[47].mxu0  ;;  %v3096_v32 = vpop.f32.mrb[37].mxu1  ;;  %v1376_v33 = vsel %vm365_vm3, %v1374_v29, -inf }
 0xa9f   :  { %v1371_v34 = vpop.f32.mrb[38].mxu1  ;;  %1377 = vmax.xlane.f32.xlu0 %v1376_v33 }
 0xaa0   :  { %v3097_v35 = vpop.f32.mrb[39].mxu1  ;;  %v1379_v36 = vsel %vm365_vm3, %v1375_v30, -inf }
 0xaa1   :  { %1380 = vmax.xlane.f32.xlu1 %v1379_v36  ;;  %v2772_v35 = vld [vmem:[%s4028_s4 + $0xb] ss:$0 sm:$0xff] }
 0xb2c   :  { %v1378_v37 = vpop.xlane.xlu0 %1377 }
 0xb2d   :  { %v1382_v38 = vsub.f32 %v1374_v29, %v1378_v37 }
 0xb2e   :  { %v1381_v39 = vpop.xlane.xlu1 %1380 }
 0xb2f   :  { %v1384_v40 = vmul.f32 1.442695, %v1382_v38  ;;  %v1383_v41 = vsub.f32 %v1375_v30, %v1381_v39 }
 0xb31   :  { %3309 = vpow2.f32 %v1384_v40  ;;  %v1386_v42 = vmul.f32 1.442695, %v1383_v41 }
 0xb33   :  { %3311 = vpow2.f32 %v1386_v42 }
 0xb3b   :  { %v3310_v43 = vpop.eup %3309 }
 0xb3c   :  { %v1388_v44 = vsel %vm365_vm3, %v3310_v43, 0.0 }
 0xb3d   :  { %v3312_v45 = vpop.eup %3311  ;;  %1389 = vadd.xlane.f32.xlu0 %v1388_v44 }
 0xb3e   :  { %v1391_v46 = vsel %vm365_vm3, %v3312_v45, 0.0 }
 0xb3f   :  { %1392 = vadd.xlane.f32.xlu1 %v1391_v46 }
 0xbca   :  { %v1390_v47 = vpop.xlane.xlu0 %1389 }
 0xbcb   :  { %3313 = vrcp.f32 %v1390_v47 }
 0xbcc   :  { %v1393_v48 = vpop.xlane.xlu1 %1392 }
 0xbcd   :  { %3315 = vrcp.f32 %v1393_v48 }
 0xbd5   :  { %v3314_v49 = vpop.eup %3313 }
 0xbd6   :  { %v1395_v52 = vmul.f32 %v3314_v49, %v3310_v43 }
 0xbd7   :  { %v3316_v53 = vpop.eup %3315 }
 0xbd8   :  { %v1397_v54 = vmul.f32 %v3316_v53, %v3312_v45  ;;  %v1398_v55 = vpack.c.bf16 %v1395_v52, %v1395_v52 }
 0xbda   :  { %3101 = vmatmul.mubr.msk.bf16.vlgmr.msra.gmra.mrb[48].mxu0 %vm365_vm3, %v1398_v55  ;;  %v1399_v59 = vpack.c.bf16 %v1397_v54, %v1397_v54 }
 0xbdb   :  { %3111 = vmatpush3.bf16.msra.mxu0 %v1501_v56  ;;  %3112 = vmatprep.mubr.msk.bf16.mxu0 %vm3355_vm1, %v3354_v1 }
 0xbdc   :  { %3107 = vmatmul.mubr.msk.bf16.vlgmr.msra.gmra.mrb[40].mxu1 %vm365_vm3, %v1399_v59  ;;  %3124 = vmatprep.subr.bf16.mxu0 %v3354_v1 }
 0xbdd   :  { %3117 = vmatpush3.bf16.msra.mxu1 %v3261_v58  ;;  %3120 = vmatprep.mubr.msk.bf16.mxu1 %vm3355_vm1, %v3354_v1 }
 0xbde   :  { %3118 = vmatprep.subr.bf16.mxu1 %v3354_v1 }
 0xbe1   :  { %3119 = vmatpush3.bf16.msra.mxu1 %v3262_v61 }
 0xbe2   :  { %3132 = vmatprep.subr.bf16.mxu1 %v3354_v1 }
 0xbe4   :  { %3121 = vmatmul.mubr.msk.bf16.vlgmr.msra.gmra.mrb[44].mxu1 %vm114_vm2, %v3487_v51 }
 0xbe5   :  { %3133 = vmatpush3.bf16.msra.mxu1 %v3263_v62  ;;  %3136 = vmatprep.mubr.msk.bf16.mxu1 %vm3355_vm1, %v3354_v1 }
 0xbe6   :  { %3134 = vmatprep.subr.bf16.mxu1 %v3354_v1 }
 0xbe9   :  { %3135 = vmatpush3.bf16.msra.mxu1 %v3264_v63 }
 0xbea   :  { %3146 = vmatprep.subr.bf16.mxu1 %v3354_v1 }
 0xbec   :  { %3137 = vmatmul.mubr.msk.bf16.vlgmr.msra.gmra.mrb[48].mxu1 %vm114_vm2, %v3487_v51 }
 0xbed   :  { %3148 = vmatprep.mubr.msk.bf16.mxu1 %vm3355_vm1, %v3354_v1 }
 0xcad   :  { %v1442_v2 = vpop.f32.mrb[48].mxu0 }
 0xcae   :  { %v3102_v3 = vpop.f32.mrb[49].mxu0 }
 0xcaf   :  { %v1445_v8 = vpop.f32.mrb[50].mxu0  ;;  %v1488_v9 = vpop.f32.mrb[40].mxu1 }
 0xcb0   :  { %v1494_v15 = vpack.c.bf16 %v1488_v9, %v1442_v2  ;;  %v3103_v16 = vpop.f32.mrb[51].mxu0  ;;  %v3108_v17 = vpop.f32.mrb[41].mxu1 }
 0xcb1   :  { %v1491_v18 = vpop.f32.mrb[42].mxu1 }
 0xcb2   :  { %v3109_v19 = vpop.f32.mrb[43].mxu1  ;;  %3113 = vmatmul.mubr.msk.bf16.vlgmr.msra.gmra.mrb[52].mxu0 %vm365_vm3, %v1494_v15 }
 0xcb3   :  { %3125 = vmatpush3.bf16.msra.mxu0 %v3265_v12  ;;  %3128 = vmatprep.mubr.msk.bf16.mxu0 %vm3355_vm1, %v3354_v1 }
 0xcb4   :  { %3126 = vmatprep.subr.bf16.mxu0 %v3354_v1 }
 0xcb7   :  { %v1603_v21 = vpop.f32.mrb[44].mxu1  ;;  %3127 = vmatpush3.bf16.msra.mxu0 %v3266_v20 }
 0xcb8   :  { %v3122_v22 = vpop.f32.mrb[45].mxu1  ;;  %3140 = vmatprep.subr.bf16.mxu0 %v3354_v1 }
 0xcb9   :  { %v1606_v23 = vpop.f32.mrb[46].mxu1 }
 0xcba   :  { %v3123_v24 = vpop.f32.mrb[47].mxu1  ;;  %3129 = vmatmul.mubr.msk.bf16.vlgmr.msra.gmra.mrb[56].mxu0 %vm114_vm2, %v3487_v51  ;;  %v2764_v51 = vld [vmem:[%s4028_s4 + $0x7] ss:$0 sm:$0xff] }
 0xcbb   :  { %3142 = vmatprep.mubr.msk.bf16.mxu0 %vm3355_vm1, %v3354_v1 }
 0xcbf   :  { %v1731_v25 = vpop.f32.mrb[48].mxu1 }
 0xcc0   :  { %v3138_v26 = vpop.f32.mrb[49].mxu1  ;;  %v1732_v39 = vadd.f32 %v2772_v35, %v1731_v25 }
 0xcc1   :  { %v1734_v27 = vpop.f32.mrb[50].mxu1  ;;  %v2780_v26 = vld [vmem:[%s4029_s5 + $0xc] sm:$0xf] }
 0xcc2   :  { %v3139_v28 = vpop.f32.mrb[51].mxu1  ;;  %v1735_v43 = vadd.f32 %v2772_v35, %v1734_v27  ;;  %v1860_v46 = vpack.c.bf16 %v1732_v39, %v1732_v39 }
 0xcc4   :  { %v1861_v48 = vpack.c.bf16 %v1735_v43, %v1735_v43  ;;  %v1866_v50 = vsel %vm489_vm4, %v1860_v46, 0 }
 0xcc6   :  { %v1912_v52 = vsel %vm489_vm4, %v1861_v48, 0 }
 0xd85   :  { %v1537_v29 = vpop.f32.mrb[52].mxu0 }
 0xd86   :  { %v3751_v0 = vadd.f32 %v1537_v29, %v3676_v57  ;;  %v3114_v4 = vpop.f32.mrb[53].mxu0 }
 0xd87   :  { %v1540_v5 = vpop.f32.mrb[54].mxu0 }
 0xd88   :  { %v3754_v30 = vadd.f32 %v1540_v5, %v3678_v60  ;;  %v3115_v31 = vpop.f32.mrb[55].mxu0  ;;  %v2756_v60 = vld [vmem:[%s4028_s4 + $0x3] ss:$0 sm:$0xff]  ;;  %v1961_v5 = vsel %vm489_vm4, %v2780_v26, 0 }
 0xd89   :  { %v1604_v42 = vadd.f32 %v2756_v60, %v1603_v21  ;;  %v1607_v45 = vadd.f32 %v2756_v60, %v1606_v23  ;;  %v2010_v60 = vsub.s32 6, %v3440_v6 }
 0xd8b   :  { %v1738_v47 = vpack.c.bf16 %v1604_v42, %v1604_v42  ;;  %v1739_v49 = vpack.c.bf16 %v1607_v45, %v1607_v45 }
 0xd8d   :  { %v1667_v32 = vpop.f32.mrb[56].mxu0 }
 0xd8e   :  { %v1668_v33 = vadd.f32 %v2764_v51, %v1667_v32  ;;  %v3130_v34 = vpop.f32.mrb[57].mxu0 }
 0xd8f   :  { %v1670_v36 = vpop.f32.mrb[58].mxu0 }
 0xd90   :  { %v1740_v57 = vpack.c.bf16 %v1668_v33, %v1668_v33  ;;  %v1671_v37 = vadd.f32 %v2764_v51, %v1670_v36  ;;  %v3131_v38 = vpop.f32.mrb[59].mxu0 }
 0xd92   :  { %v1746_v40 = vsel %vm365_vm3, %v1740_v57, 0  ;;  %v1741_v41 = vpack.c.bf16 %v1671_v37, %v1671_v37 }
 0xd93   :  { %3141 = vmatpush3.bf16.xpose.msra.mxu0 %v1746_v40 }
 0xd94   :  { %v1792_v44 = vsel %vm365_vm3, %v1741_v41, 0  ;;  %3152 = vmatprep.subr.bf16.mxu0 %v3354_v1  ;;  %v3802_v41 = vld [vmem:[%s4026_s2] sm:$0xff] }
 0xd95   :  { %3147 = vmatpush3.bf16.xpose.msra.mxu1 %v1792_v44  ;;  %v2011_v42 = vrot.slane %v3802_v41, %v2010_v60 }
 0xd96   :  { %3158 = vmatprep.subr.bf16.mxu1 %v3354_v1 }
 0xd9a   :  { %3143 = vmatmul.mubr.msk.bf16.vlgmr.msra.gmra.mrb[60].mxu0 %vm365_vm3, %v1738_v47 }
 0xd9b   :  { %3153 = vmatpush3.bf16.msra.mxu0 %v1866_v50  ;;  %3154 = vmatprep.mubr.msk.bf16.mxu0 %vm3355_vm1, %v3354_v1 }
 0xd9c   :  { %3149 = vmatmul.mubr.msk.bf16.vlgmr.msra.gmra.mrb[52].mxu1 %vm365_vm3, %v1739_v49  ;;  %3164 = vmatprep.subr.bf16.mxu0 %v3354_v1 }
 0xd9d   :  { %3159 = vmatpush3.bf16.msra.mxu1 %v1912_v52  ;;  %3160 = vmatprep.mubr.msk.bf16.mxu1 %vm3355_vm1, %v3354_v1 }
 0xd9e   :  { %3170 = vmatprep.subr.bf16.mxu1 %v3354_v1 }
 0xe6d   :  { %v1782_v53 = vpop.f32.mrb[60].mxu0 }
 0xe6e   :  { %v1834_v54 = vmul.f32 0.35355338, %v1782_v53  ;;  %v3144_v55 = vpop.f32.mrb[61].mxu0 }
 0xe6f   :  { %v1785_v56 = vpop.f32.mrb[62].mxu0  ;;  %v1828_v58 = vpop.f32.mrb[52].mxu1 }
 0xe70   :  { %v1835_v59 = vmul.f32 0.35355338, %v1828_v58  ;;  %v3145_v61 = vpop.f32.mrb[63].mxu0  ;;  %v3150_v62 = vpop.f32.mrb[53].mxu1  ;;  %v1836_v63 = vsel %vm365_vm3, %v1834_v54, -inf }
 0xe71   :  { %v1831_v2 = vpop.f32.mrb[54].mxu1  ;;  %1837 = vmax.xlane.f32.xlu0 %v1836_v63  ;;  %v106_v62 = vsub.s32 1, %v3440_v6 }
 0xe72   :  { %v3151_v3 = vpop.f32.mrb[55].mxu1  ;;  %v1839_v8 = vsel %vm365_vm3, %v1835_v59, -inf  ;;  %v3267_v2 = vld [vmem:[%s4030_s6] sm:$0xff]  }
 0xe73   :  { %1840 = vmax.xlane.f32.xlu1 %v1839_v8  ;;  %v107_v63 = vrot.slane %v3802_v41, %v106_v62  ;;  %v3268_v3 = vld [vmem:[%s4030_s6 + $0x8] sm:$0xff]   ;;  %s3357_s6 = smov 96   ;;  %v2059_v62 = vsub.s32 7, %v3440_v6 }
 0xefe   :  { %v1838_v9 = vpop.xlane.xlu0 %1837 }
 0xeff   :  { %v1842_v12 = vsub.f32 %v1834_v54, %v1838_v9 }
 0xf00   :  { %v1841_v15 = vpop.xlane.xlu1 %1840 }
 0xf01   :  { %v1844_v16 = vmul.f32 1.442695, %v1842_v12  ;;  %v1843_v17 = vsub.f32 %v1835_v59, %v1841_v15 }
 0xf03   :  { %3317 = vpow2.f32 %v1844_v16  ;;  %v1846_v18 = vmul.f32 1.442695, %v1843_v17 }
 0xf05   :  { %3319 = vpow2.f32 %v1846_v18 }
 0xf0d   :  { %v3318_v19 = vpop.eup %3317 }
 0xf0e   :  { %v1848_v20 = vsel %vm365_vm3, %v3318_v19, 0.0 }
 0xf0f   :  { %v3320_v21 = vpop.eup %3319  ;;  %1849 = vadd.xlane.f32.xlu0 %v1848_v20 }
 0xf10   :  { %v1851_v22 = vsel %vm365_vm3, %v3320_v21, 0.0 }
 0xf11   :  { %1852 = vadd.xlane.f32.xlu1 %v1851_v22  ;;  %v2042_v22 = vsub.s32 4, %v3440_v6 }
 0xf9c   :  { %v1850_v23 = vpop.xlane.xlu0 %1849 }
 0xf9d   :  { %3321 = vrcp.f32 %v1850_v23  ;;  %v2043_v23 = vrot.slane %v3802_v41, %v2042_v22 }
 0xf9e   :  { %v1853_v24 = vpop.xlane.xlu1 %1852 }
 0xf9f   :  { %3323 = vrcp.f32 %v1853_v24  ;;  %v2048_v24 = vsub.s32 5, %v3440_v6 }
 0xfa7   :  { %v3322_v25 = vpop.eup %3321 }
 0xfa8   :  { %v1855_v27 = vmul.f32 %v3322_v25, %v3318_v19 }
 0xfa9   :  { %v3324_v28 = vpop.eup %3323 }
 0xfaa   :  { %v1857_v29 = vmul.f32 %v3324_v28, %v3320_v21  ;;  %v1858_v4 = vpack.c.bf16 %v1855_v27, %v1855_v27 }
 0xfac   :  { %3155 = vmatmul.mubr.msk.bf16.vlgmr.msra.gmra.mrb[64].mxu0 %vm365_vm3, %v1858_v4  ;;  %v1859_v31 = vpack.c.bf16 %v1857_v29, %v1857_v29 }
 0xfad   :  { %3165 = vmatpush3.bf16.msra.mxu0 %v1961_v5  ;;  %3166 = vmatprep.mubr.msk.bf16.mxu0 %vm3355_vm1, %v3354_v1 }
 0xfae   :  { %3161 = vmatmul.mubr.msk.bf16.vlgmr.msra.gmra.mrb[56].mxu1 %vm365_vm3, %v1859_v31  ;;  %3178 = vmatprep.subr.bf16.mxu0 %v3354_v1  ;;  %v3269_v31 = vld [vmem:[%s4032_s8] sm:$0xff]  }
 0xfaf   :  { %3174 = vmatprep.mubr.msk.bf16.mxu1 %vm3355_vm1, %v3354_v1  ;;  %3171 = vmatpush3.bf16.msra.mxu1 %v3267_v2  ;;  %v2060_v2 = vrot.slane %v3802_v41, %v2059_v62 }
 0xfb0   :  { %3172 = vmatprep.subr.bf16.mxu1 %v3354_v1 }
 0xfb3   :  { %3173 = vmatpush3.bf16.msra.mxu1 %v3268_v3 }
 0xfb4   :  { %3186 = vmatprep.subr.bf16.mxu1 %v3354_v1 }
0x107f   :  { %v1902_v51 = vpop.f32.mrb[64].mxu0 }
0x1080   :  { %v3156_v32 = vpop.f32.mrb[65].mxu0 }
0x1081   :  { %v1905_v33 = vpop.f32.mrb[66].mxu0  ;;  %v1948_v34 = vpop.f32.mrb[56].mxu1  ;;  %v3270_v32 = vld [vmem:[%s4032_s8 + $0x8] sm:$0xff]  }
0x1082   :  { %v1954_v35 = vpack.c.bf16 %v1948_v34, %v1902_v51  ;;  %v3157_v36 = vpop.f32.mrb[67].mxu0  ;;  %v3162_v57 = vpop.f32.mrb[57].mxu1  ;;  %v3271_v33 = vld [vmem:[%s4032_s8 + $0x10] sm:$0xff]   ;;  %v3272_v34 = vld [vmem:[%s4032_s8 + $0x18] sm:$0xff]  }
0x1083   :  { %v1951_v37 = vpop.f32.mrb[58].mxu1  ;;  %v3274_v36 = vld [vmem:[%s4032_s8 + $0x20] sm:$0xff]   ;;  %v3275_v57 = vld [vmem:[%s4031_s7 + $0x8] sm:$0xff]  }
0x1084   :  { %v3163_v38 = vpop.f32.mrb[59].mxu1  ;;  %3167 = vmatmul.mubr.msk.bf16.vlgmr.msra.gmra.mrb[68].mxu0 %vm365_vm3, %v1954_v35  ;;  %v3273_v35 = vld [vmem:[%s4031_s7] sm:$0xff]   ;;  %v3276_v37 = vld [vmem:[%s4032_s8 + $0x28] sm:$0xff]   ;;  %s3358_s7 = smov 64  }
0x1085   :  { %3182 = vmatprep.mubr.msk.bf16.mxu0 %vm3355_vm1, %v3354_v1  ;;  %3179 = vmatpush3.bf16.msra.mxu0 %v3273_v35  ;;  %v3284_v35 = vld [vmem:[%s4032_s8 + $0x78] sm:$0xff]  }
0x1086   :  { %3180 = vmatprep.subr.bf16.mxu0 %v3354_v1 }
0x1089   :  { %3181 = vmatpush3.bf16.msra.mxu0 %v3275_v57 }
0x108a   :  { %3202 = vmatprep.subr.bf16.mxu0 %v3354_v1 }
0x1157   :  { %v1997_v39 = vpop.f32.mrb[68].mxu0 }
0x1158   :  { %v2004_v40 = vadd.f32 %v1997_v39, %v3751_v0  ;;  %v3168_v43 = vpop.f32.mrb[69].mxu0 }
0x1159   :  { %v2000_v44 = vpop.f32.mrb[70].mxu0 }
0x115a   :  { %v2006_v45 = vadd.f32 %v2004_v40, %v3451_v11  ;;  %v2005_v46 = vadd.f32 %v2000_v44, %v3754_v30  ;;  %v3169_v47 = vpop.f32.mrb[71].mxu0 }
0x115c   :  { %v3807_v48 = vadd.f32 %v2011_v42, %v2006_v45  ;;  %v2007_v49 = vadd.f32 %v2005_v46, %v3456_v14 }
0x115e   :  { %v3810_v50 = vadd.f32 %v2011_v42, %v2007_v49  ;;  %v2014_v0 = vsel %vm114_vm2, %v3807_v48, 0.0 }
0x115f   :  { %2015 = vadd.xlane.f32.xlu0 %v2014_v0 }
0x1160   :  { %v2017_v52 = vsel %vm114_vm2, %v3810_v50, 0.0 }
0x1161   :  { %2018 = vadd.xlane.f32.xlu1 %v2017_v52 }
0x11ec   :  { %v2016_v53 = vpop.xlane.xlu0 %2015 }
0x11ed   :  { %v2020_v54 = vmul.f32 0.03125, %v2016_v53 }
0x11ee   :  { %v2019_v11 = vpop.xlane.xlu1 %2018 }
0x11ef   :  { %v2022_v30 = vsub.f32 %v3807_v48, %v2020_v54  ;;  %v2021_v55 = vmul.f32 0.03125, %v2019_v11 }
0x11f1   :  { %v2023_v56 = vsub.f32 %v3810_v50, %v2021_v55  ;;  %v2024_v58 = vmul.f32 %v2022_v30, %v2022_v30 }
0x11f3   :  { %v2026_v14 = vsel %vm114_vm2, %v2024_v58, 0.0  ;;  %v2025_v59 = vmul.f32 %v2023_v56, %v2023_v56 }
0x11f4   :  { %2027 = vadd.xlane.f32.xlu0 %v2026_v14 }
0x11f5   :  { %v2029_v61 = vsel %vm114_vm2, %v2025_v59, 0.0 }
0x11f6   :  { %2030 = vadd.xlane.f32.xlu1 %v2029_v61 }
0x120a   :  { %109 = vrot.lane.b32.xlu0 %v107_v63, %s3356_s20 }
0x1281   :  { %v2028_v8 = vpop.xlane.xlu0 %2027 }
0x1282   :  { %v2032_v9 = vmul.f32 0.03125, %v2028_v8 }
0x1283   :  { %v2031_v12 = vpop.xlane.xlu1 %2030 }
0x1284   :  { %v2034_v15 = vadd.f32 1e-05, %v2032_v9  ;;  %v2033_v16 = vmul.f32 0.03125, %v2031_v12 }
0x1285   :  { %v110_v17 = vpop.permute.xlu0 %109 }
0x1286   :  { %3325 = vrsqrt.f32 %v2034_v15  ;;  %v2035_v18 = vadd.f32 1e-05, %v2033_v16  ;;  %v112_v19 = vadd.f32 %v110_v17, %v3448_v10  ;;  %v113_v20 = vadd.f32 %v110_v17, %v3453_v13 }
0x1287   :  { %v2049_v13 = vrot.slane %v3802_v41, %v2048_v24  ;;  %v3277_v41 = vld [vmem:[%s4032_s8 + $0x30] sm:$0xff]  }
0x1288   :  { %3327 = vrsqrt.f32 %v2035_v18  ;;  %v3833_v21 = vpack.c.bf16 %v113_v20, %v112_v19  ;;  %2192 = vrot.lane.b32.xlu1 %v112_v19, %s3357_s6 }
0x128c   :  { %2194 = vrot.lane.b32.xlu1 %v113_v20, %s3357_s6 }
0x1290   :  { %v3326_v25 = vpop.eup %3325 }
0x1291   :  { %v2038_v26 = vmul.f32 %v3326_v25, %v2022_v30 }
0x1292   :  { %v3328_v27 = vpop.eup %3327 }
0x1293   :  { %v2044_v10 = vmul.f32 %v2043_v23, %v2038_v26  ;;  %v2039_v28 = vmul.f32 %v3328_v27, %v2023_v56  ;;  %v3278_v27 = vld [vmem:[%s4032_s8 + $0x60] sm:$0xff]  }
0x1295   :  { %v2045_v29 = vmul.f32 %v2043_v23, %v2039_v28  ;;  %v2050_v4 = vadd.f32 %v2049_v13, %v2044_v10 }
0x1297   :  { %v2051_v5 = vadd.f32 %v2049_v13, %v2045_v29  ;;  %v3279_v29 = vld [vmem:[%s4032_s8 + $0x38] sm:$0xff]  }
0x1299   :  { %v2052_v51 = vpack.c.bf16 %v2051_v5, %v2050_v4  ;;  %v3280_v4 = vld [vmem:[%s4032_s8 + $0x68] sm:$0xff]   ;;  %v3281_v5 = vld [vmem:[%s4032_s8 + $0x40] sm:$0xff]  }
0x129b   :  { %3175 = vmatmul.mubr.msk.bf16.vlgmr.msra.gmra.mrb[60].mxu1 %vm114_vm2, %v2052_v51 }
0x129c   :  { %3187 = vmatpush3.bf16.msra.mxu1 %v3269_v31  ;;  %3198 = vmatprep.mubr.msk.bf16.mxu1 %vm3355_vm1, %v3354_v1  ;;  %v3282_v31 = vld [vmem:[%s4032_s8 + $0x70] sm:$0xff]  }
0x129d   :  { %3188 = vmatprep.subr.bf16.mxu1 %v3354_v1 }
0x12a0   :  { %3189 = vmatpush3.bf16.msra.mxu1 %v3270_v32  ;;  %v3283_v32 = vld [vmem:[%s4032_s8 + $0x48] sm:$0xff]  }
0x12a1   :  { %3190 = vmatprep.subr.bf16.mxu1 %v3354_v1 }
0x12a4   :  { %3191 = vmatpush3.bf16.msra.mxu1 %v3271_v33 }
0x12a5   :  { %3192 = vmatprep.subr.bf16.mxu1 %v3354_v1 }
0x12a8   :  { %3193 = vmatpush3.bf16.msra.mxu1 %v3272_v34 }
0x12a9   :  { %3194 = vmatprep.subr.bf16.mxu1 %v3354_v1 }
0x12ac   :  { %3195 = vmatpush3.bf16.msra.mxu1 %v3274_v36 }
0x12ad   :  { %3196 = vmatprep.subr.bf16.mxu1 %v3354_v1 }
0x12b0   :  { %3197 = vmatpush3.bf16.msra.mxu1 %v3276_v37 }
0x12b1   :  { %3218 = vmatprep.subr.bf16.mxu1 %v3354_v1 }
0x12fa   :  { %v3876_v38 = vpop.permute.xlu1 %2192 }
0x12fb   :  { %v2346_v39 = vrot.slane %v3876_v38, 2  ;;  %v2206_v42 = vrot.slane %v3876_v38, 1  ;;  %v2486_v45 = vrot.slane %v3876_v38, 3  ;;  %v2198_v3 = vrot.slane %v3876_v38, 7 }
0x12fc   :  { %v2338_v33 = vrot.slane %v3876_v38, 6  ;;  %v2478_v37 = vrot.slane %v3876_v38, 5 }
0x12fe   :  { %v3878_v60 = vpop.permute.xlu1 %2194 }
0x12ff   :  { %v2347_v40 = vrot.slane %v3878_v60, 2  ;;  %v2207_v43 = vrot.slane %v3878_v60, 1  ;;  %v2487_v44 = vrot.slane %v3878_v60, 3  ;;  %v2199_v63 = vrot.slane %v3878_v60, 7 }
0x1300   :  { %v2339_v51 = vrot.slane %v3878_v60, 6  ;;  %v2479_v34 = vrot.slane %v3878_v60, 5 }
0x1301   :  { %v2348_v46 = vsel %vm2345_vm5, %v2346_v39, %v2347_v40  ;;  %v2349_v47 = vsel %vm2345_vm5, %v2347_v40, %v2346_v39  ;;  %v2208_v49 = vsel %vm2205_vm6, %v2206_v42, %v2207_v43  ;;  %v2209_v0 = vsel %vm2205_vm6, %v2207_v43, %v2206_v42  ;;  %v3285_v39 = vld [vmem:[%s4032_s8 + $0x50] sm:$0xff]  }
0x1302   :  { %v2350_v52 = vsel %vm2345_vm5, %v2348_v46, 0.0  ;;  %v2351_v53 = vsel %vm2345_vm5, %v2349_v47, 0.0  ;;  %v2210_v54 = vsel %vm2205_vm6, %v2208_v49, 0.0  ;;  %v2211_v11 = vsel %vm2205_vm6, %v2209_v0, 0.0  ;;  %v3287_v49 = vld [vmem:[%s4032_s8 + $0x58] sm:$0xff]  }
0x1303   :  { %v2353_v30 = vpack.c.bf16 %v2351_v53, %v2350_v52  ;;  %v2213_v55 = vpack.c.bf16 %v2211_v11, %v2210_v54  ;;  %v2488_v56 = vsel %vm2485_vm7, %v2486_v45, %v2487_v44  ;;  %v2489_v58 = vsel %vm2485_vm7, %v2487_v44, %v2486_v45  ;;  %v3286_v45 = vld [vmem:[%s4032_s8 + $0x80] sm:$0xff]   ;;  %v3288_v52 = vld [vmem:[%s4032_s8 + $0x88] sm:$0xff]  }
0x1304   :  { %v2490_v14 = vsel %vm2485_vm7, %v2488_v56, 0.0  ;;  %v2491_v59 = vsel %vm2485_vm7, %v2489_v58, 0.0  ;;  %v2201_v8 = vsel %vm2200_vm8, %v2198_v3, %v2199_v63  ;;  %v2202_v9 = vsel %vm2200_vm8, %v2199_v63, %v2198_v3  ;;  %v2796_v63 = vld [vmem:[%s4034_s10] ss:$0 sm:$0xff] }
0x1305   :  { %2355 = vrot.lane.b32.xlu0 %v2353_v30, %s3358_s7  ;;  %2215 = vrot.lane.b32.xlu1 %v2213_v55, %s3358_s7  ;;  %v2493_v61 = vpack.c.bf16 %v2491_v59, %v2490_v14  ;;  %v2203_v18 = vsel %vm2189_vm9, %v2202_v9, 0.0  ;;  %v2204_v19 = vsel %vm2189_vm9, %v2201_v8, 0.0  ;;  %v2341_v36 = vsel %vm2340_vm12, %v2338_v33, %v2339_v51 }
0x1306   :  { %v2212_v25 = vpack.c.bf16 %v2204_v19, %v2203_v18  ;;  %v2342_v57 = vsel %vm2340_vm12, %v2339_v51, %v2338_v33  ;;  %v2481_v40 = vsel %vm2480_vm13, %v2478_v37, %v2479_v34  ;;  %v2482_v42 = vsel %vm2480_vm13, %v2479_v34, %v2478_v37 }
0x1307   :  { %v2343_v43 = vsel %vm2337_vm14, %v2342_v57, 0.0  ;;  %v2344_v44 = vsel %vm2337_vm14, %v2341_v36, 0.0  ;;  %v2483_v46 = vsel %vm2477_vm15, %v2482_v42, 0.0  ;;  %v2484_v47 = vsel %vm2477_vm15, %v2481_v40, 0.0 }
0x1308   :  { %v2219_v28 = vsel %vm114_vm2, %v2212_v25, %v3833_v21  ;;  %v2352_v0 = vpack.c.bf16 %v2344_v44, %v2343_v43  ;;  %v2492_v54 = vpack.c.bf16 %v2484_v47, %v2483_v46  ;;  %v2840_v25 = vld [vmem:[%s4033_s9 + $0x2] ss:$0 sm:$0xff]  ;;  %v41_v46 = vld [vmem:[%s4026_s2 + $0x8] sm:$0xff] }
0x1309   :  { %2495 = vrot.lane.b32.xlu1 %v2493_v61, %s3358_s7  ;;  %v2127_v47 = vrot.slane %v41_v46, %v100_v7 }
0x130a   :  { %v2358_v11 = vsel %vm114_vm2, %v2352_v0, %v3833_v21  ;;  %v2498_v56 = vsel %vm114_vm2, %v2492_v54, %v3833_v21 }
0x136e   :  { %v2110_v12 = vpop.f32.mrb[60].mxu1 }
0x136f   :  { %v2111_v15 = vadd.f32 %v2110_v12, %v2060_v2  ;;  %v3176_v16 = vpop.f32.mrb[61].mxu1 }
0x1370   :  { %v2113_v17 = vpop.f32.mrb[62].mxu1 }
0x1371   :  { %v2114_v20 = vadd.f32 %v2113_v17, %v2060_v2  ;;  %v3177_v22 = vpop.f32.mrb[63].mxu1  ;;  %v2117_v23 = vmax.f32 %v2111_v15, 0.0 }
0x1372   :  { %v2817_v22 = vld [vmem:[%s4033_s9 + $0x1] ss:$0 sm:$0xff] }
0x1373   :  { %v2118_v24 = vmax.f32 %v2114_v20, 0.0 }
0x1375   :  { %v2119_v26 = vpack.c.bf16 %v2118_v24, %v2117_v23  ;;  %v2819_v24 = vld [vmem:[%s4034_s10 + $0x1] ss:$0 sm:$0xff] }
0x1377   :  { %3183 = vmatmul.mubr.msk.bf16.vlgmr.msra.gmra.mrb[72].mxu0 %vm114_vm2, %v2119_v26  ;;  %v2216_v10 = vpop.permute.xlu1 %2215  ;;  %v2356_v53 = vpop.permute.xlu0 %2355 }
0x1378   :  { %3203 = vmatpush3.bf16.msra.mxu0 %v3277_v41  ;;  %v2222_v13 = vsel %vm2220_vm10, %v2219_v28, %v2216_v10  ;;  %3214 = vmatprep.mubr.msk.bf16.mxu0 %vm3355_vm1, %v3354_v1  ;;  %v2360_v55 = vsel %vm2220_vm10, %v2358_v11, %v2356_v53  ;;  %v2842_v28 = vld [vmem:[%s4034_s10 + $0x2] ss:$0 sm:$0xff] }
0x1379   :  { %3199 = vmatmul.mubr.msk.bf16.vlgmr.msra.gmra.mrb[64].mxu1 %vm2271_vm11, %v2222_v13  ;;  %3204 = vmatprep.subr.bf16.mxu0 %v3354_v1 }
0x137a   :  { %3219 = vmatpush3.bf16.msra.mxu1 %v3278_v27  ;;  %3230 = vmatprep.mubr.msk.bf16.mxu1 %vm3355_vm1, %v3354_v1 }
0x137b   :  { %3220 = vmatprep.subr.bf16.mxu1 %v3354_v1  ;;  %v2496_v30 = vpop.permute.xlu1 %2495 }
0x137c   :  { %3205 = vmatpush3.bf16.msra.mxu0 %v3279_v29  ;;  %v2500_v58 = vsel %vm2220_vm10, %v2498_v56, %v2496_v30 }
0x137d   :  { %3206 = vmatprep.subr.bf16.mxu0 %v3354_v1 }
0x137e   :  { %3221 = vmatpush3.bf16.msra.mxu1 %v3280_v4 }
0x137f   :  { %3222 = vmatprep.subr.bf16.mxu1 %v3354_v1 }
0x1380   :  { %3207 = vmatpush3.bf16.msra.mxu0 %v3281_v5 }
0x1381   :  { %3208 = vmatprep.subr.bf16.mxu0 %v3354_v1 }
0x1382   :  { %3223 = vmatpush3.bf16.msra.mxu1 %v3282_v31 }
0x1383   :  { %3224 = vmatprep.subr.bf16.mxu1 %v3354_v1 }
0x1384   :  { %3209 = vmatpush3.bf16.msra.mxu0 %v3283_v32 }
0x1385   :  { %3210 = vmatprep.subr.bf16.mxu0 %v3354_v1 }
0x1386   :  { %3225 = vmatpush3.bf16.msra.mxu1 %v3284_v35 }
0x1387   :  { %3226 = vmatprep.subr.bf16.mxu1 %v3354_v1 }
0x1388   :  { %3211 = vmatpush3.bf16.msra.mxu0 %v3285_v39 }
0x1389   :  { %3212 = vmatprep.subr.bf16.mxu0 %v3354_v1 }
0x138a   :  { %3227 = vmatpush3.bf16.msra.mxu1 %v3286_v45 }
0x138b   :  { %3228 = vmatprep.subr.bf16.mxu1 %v3354_v1  ;;  %v2795_v1 = vld [vmem:[%s4033_s9] ss:$0 sm:$0xff] }
0x138c   :  { %3213 = vmatpush3.bf16.msra.mxu0 %v3287_v49 }
0x138e   :  { %3229 = vmatpush3.bf16.msra.mxu1 %v3288_v52 }
0x138f   :  { %3215 = vmatmul.mubr.msk.bf16.vlgmr.msra.gmra.mrb[76].mxu0 %vm2271_vm11, %v2360_v55 }
0x1391   :  { %3231 = vmatmul.mubr.msk.bf16.vlgmr.msra.gmra.mrb[68].mxu1 %vm2271_vm11, %v2500_v58 }
0x144a   :  { %v2177_v14 = vpop.f32.mrb[72].mxu0 }
0x144b   :  { %v3184_v59 = vpop.f32.mrb[73].mxu0  ;;  %v2178_v0 = vadd.f32 %v2177_v14, %v2127_v47 }
0x144c   :  { %v2180_v61 = vpop.f32.mrb[74].mxu0  ;;  %v2308_v62 = vpop.f32.mrb[64].mxu1 }
0x144d   :  { %v2322_v2 = vmul.f32 %v2795_v1, %v2308_v62  ;;  %v3185_v21 = vpop.f32.mrb[75].mxu0  ;;  %v3200_v3 = vpop.f32.mrb[65].mxu1  ;;  %v2181_v53 = vadd.f32 %v2180_v61, %v2127_v47 }
0x144e   :  { %v2311_v8 = vpop.f32.mrb[66].mxu1 }
0x144f   :  { %v2331_v9 = vadd.f32 %v2796_v63, %v2322_v2  ;;  %v2323_v12 = vmul.f32 %v2795_v1, %v2311_v8  ;;  %v3201_v15 = vpop.f32.mrb[67].mxu1  ;;  %v2185_v30 = vadd.f32 %v2181_v53, %v3810_v50 }
0x1451   :  { %v2333_v16 = vmax.f32 %v2331_v9, 0.0  ;;  %v2332_v17 = vadd.f32 %v2796_v63, %v2323_v12 }
0x1453   :  { %v2334_v18 = vmax.f32 %v2332_v17, 0.0  ;;  %v2335_v19 = vadd.f32 %v2333_v16, %v3876_v38 }
0x1455   :  { %2619 = vrot.lane.b32.xlu0 %v2335_v19, %s3356_s20  ;;  %v2336_v20 = vadd.f32 %v2334_v18, %v3878_v60 }
0x1457   :  { %2621 = vrot.lane.b32.xlu1 %v2336_v20, %s3356_s20  ;;  %s3359_s20 = smov [#allocation2]  }
0x1462   :  { %v2446_v23 = vpop.f32.mrb[76].mxu0 }
0x1463   :  { %v2461_v41 = vmul.f32 %v2817_v22, %v2446_v23  ;;  %v3216_v26 = vpop.f32.mrb[77].mxu0 }
0x1464   :  { %v2449_v27 = vpop.f32.mrb[78].mxu0  ;;  %v2586_v10 = vpop.f32.mrb[68].mxu1 }
0x1465   :  { %v2471_v13 = vadd.f32 %v2819_v24, %v2461_v41  ;;  %v2462_v29 = vmul.f32 %v2817_v22, %v2449_v27  ;;  %v2601_v4 = vmul.f32 %v2840_v25, %v2586_v10  ;;  %v3217_v5 = vpop.f32.mrb[79].mxu0  ;;  %v3232_v31 = vpop.f32.mrb[69].mxu1 }
0x1466   :  { %v2589_v51 = vpop.f32.mrb[70].mxu1 }
0x1467   :  { %v2473_v32 = vmax.f32 %v2471_v13, 0.0  ;;  %v2472_v33 = vadd.f32 %v2819_v24, %v2462_v29  ;;  %v2611_v34 = vadd.f32 %v2842_v28, %v2601_v4  ;;  %v2602_v35 = vmul.f32 %v2840_v25, %v2589_v51  ;;  %v3233_v36 = vpop.f32.mrb[71].mxu1 }
0x1469   :  { %v2474_v57 = vmax.f32 %v2472_v33, 0.0  ;;  %v2613_v37 = vmax.f32 %v2611_v34, 0.0  ;;  %v2612_v39 = vadd.f32 %v2842_v28, %v2602_v35  ;;  %v2475_v40 = vadd.f32 %v2473_v32, %v3876_v38 }
0x146b   :  { %v2614_v42 = vmax.f32 %v2612_v39, 0.0  ;;  %2627 = vrot.lane.b32.xlu0 %v2475_v40, %s3358_s7  ;;  %v2476_v43 = vadd.f32 %v2474_v57, %v3878_v60  ;;  %v2615_v44 = vadd.f32 %v2613_v37, %v3876_v38  ;;  %v2184_v38 = vadd.f32 %v2178_v0, %v3807_v48 }
0x146d   :  { %2629 = vrot.lane.b32.xlu1 %v2476_v43, %s3358_s7  ;;  %v2616_v45 = vadd.f32 %v2614_v42, %v3878_v60 }
0x146f   :  { %2635 = vrot.lane.b32.xlu0 %v2615_v44, %s3357_s6 }
0x1471   :  { %2637 = vrot.lane.b32.xlu1 %v2616_v45, %s3357_s6  ;;  %s2654_s6 = sshll.u32 %s3359_s20, 4  ;;  %s2655_s6 = int_to_ptr.vmem [resolvable:$true] %s2654_s6 }
0x1472   :  { %s3330_s2 = scalar_lea.vmem %s2655_s6, 256  ;;  %p3335_p1 = scmp.lt.s32.totalorder %s2655_s6, %s2655_s6 }
0x1473   :  { %p3331_p0 = scmp.ne.s32.totalorder %s2655_s6, %s3330_s2  ;;  %p3336_p2 = scmp.lt.s32.totalorder %s3330_s2, %s3330_s2 }
0x1475   :  { %p3337_p3 = por %p3336_p2, %p3335_p1 }
0x1477   :  { %p3338_p4 = pnand %p3337_p3, %p3331_p0 }
0x14c7   :  { %v2620_v49 = vpop.permute.xlu0 %2619 }
0x14c8   :  { %v2641_v60 = vsel %vm114_vm2, %v2184_v38, %v2620_v49 }
0x14c9   :  { %v2622_v52 = vpop.permute.xlu1 %2621 }
0x14ca   :  { %v2642_v6 = vsel %vm114_vm2, %v2185_v30, %v2622_v52 }
0x14dd   :  { %v2628_v54 = vpop.permute.xlu0 %2627 }
0x14de   :  { %v2643_v55 = vsel %vm2220_vm10, %v2641_v60, %v2628_v54 }
0x14df   :  { %v2630_v11 = vpop.permute.xlu1 %2629 }
0x14e0   :  { %v2644_v58 = vsel %vm2220_vm10, %v2642_v6, %v2630_v11 }
0x14e1   :  { %v2636_v56 = vpop.permute.xlu0 %2635 }
0x14e2   :  { %v2645_v7 = vsel %vm2271_vm11, %v2643_v55, %v2636_v56 }
0x14e3   :  { %2647 = vst [vmem:[#allocation2] sm:$0xff] %v2645_v7  ;;  %v2638_v14 = vpop.permute.xlu1 %2637 }
0x14e4   :  { %v2646_v48 = vsel %vm2271_vm11, %v2644_v58, %v2638_v14 }
0x14e5   :  { %2648 = vst [vmem:[#allocation2 + $0x8] sm:$0xff] %v2646_v48 }
0x14e6   :  { %3341 = shalt.err (!%p3338_p4)
}
0x14e7   :  { %s3342_s29 = scalar_lea.hbm %s4035_s11, 256 }
0x14e8   :  { %p3343_p5 = scmp.ne.s32.totalorder %s4035_s11, %s3342_s29  ;;  %p3346_p6 = scmp.lt.u32.totalorder %s3342_s29, %s4035_s11 }
0x14ea   :  { %p3348_p7 = pnand %p3346_p6, %p3343_p5 }
0x14ec   :  { %3351 = shalt.err (!%p3348_p7)
}
0x14ed   :  { %s3360_s14 = smov 128   ;;  %s3361_s15 = smov 8  }
0x14ee   :  { %2660 = dma.vmem_to_hbm [thread:$0]  %s2655_s6, 256, %s4035_s11, [#allocation3], %s3360_s14, %s3360_s14, %s3361_s15  }
0x14ef   :  { %3352 = dma.done.wait [#allocation3], 256  }
0x14f0   :  { %3353 = vsyncadd [#allocation3], 4294967040 }
0x14f1   :  { %2664 = vsyncpa [#allocation3], 1 }

</bundles_post_ra>
